<compile_context>
chip_gen: v5e
topology: v5e:2x2
jax: 0.10.0
libtpu: 0.0.40
codegen_flags: <defaults>
</compile_context>

<pallas_src>
import jax
import jax.numpy as jnp
from jax import lax
from jax.experimental import pallas as pl
from jax.experimental.pallas import tpu as pltpu

K = 7          # conv kernel size
PAD = 3        # "same" padding for k=7
LN_EPS = 1e-5  # PyTorch nn.LayerNorm default


def _layernorm_ax0(v, g, b):
    """LayerNorm over the hidden/channel axis (axis 0) of an (H, N) slab.

    Two-pass (mean, then centered variance) for PyTorch-matching numerics.
    g, b are (H, 1) columns (lane-broadcast over N); rsqrt rides the EUP.
    """
    mu = jnp.mean(v, axis=0, keepdims=True)          # (1, N)
    vc = v - mu
    var = jnp.mean(vc * vc, axis=0, keepdims=True)   # (1, N)
    return vc * lax.rsqrt(var + LN_EPS) * g + b


def conv7_kernel(x_ref, wc_ref, wd_ref, vecs_ref, out_ref, xp32_ref, xp16_ref):
    # Block shapes:
    #   x_ref   : (nb, H, S)        f32   native PyTorch layout, no wrapper transpose/pad
    #   wc_ref  : (K, H_out, H_in)  bf16  per-tap conv weights (MXU LHS)
    #   wd_ref  : (H_out, H_in)     bf16  dense weight as stored by PyTorch (MXU LHS)
    #   vecs_ref: (H, 8)            f32   cols: conv_b, ln1_g, ln1_b, dense_b, ln2_g, ln2_b, 0, 0
    #   out_ref : (nb, H, S)
    #   xp32_ref: (H, nb*(S+6))     f32   zero-padded lane-banded activations (exact residual)
    #   xp16_ref: (H, nb*(S+6))     bf16  same, cast once for the MXU
    nb, H, S = x_ref.shape
    band = S + 2 * PAD                       # columns per batch in the banded scratch
    N = (nb - 1) * band + S                  # banded compute width (gap columns = ignored junk)

    # ---- build the zero-padded, lane-banded activation slab (no transposes anywhere) ----
    zpad = jnp.zeros((H, PAD), jnp.float32)
    for b in range(nb):                      # nb is small and static -> cheap unroll
        c0 = b * band
        xp32_ref[:, c0:c0 + PAD] = zpad
        xp32_ref[:, c0 + PAD:c0 + PAD + S] = x_ref[b].astype(jnp.float32)
        xp32_ref[:, c0 + PAD + S:c0 + band] = zpad
    xp16_ref[...] = xp32_ref[...].astype(jnp.bfloat16)   # single cast pass feeds all 7 taps

    conv_b = vecs_ref[:, 0:1]
    ln1_g, ln1_b = vecs_ref[:, 1:2], vecs_ref[:, 2:3]
    dense_b = vecs_ref[:, 3:4]
    ln2_g, ln2_b = vecs_ref[:, 4:5], vecs_ref[:, 5:6]

    # ---- conv k=7: K per-tap MXU matmuls, f32 accumulate (no 7H im2col slab) ----
    acc = jnp.dot(wc_ref[0], xp16_ref[:, 0:N], preferred_element_type=jnp.float32)
    for t in range(1, K):
        acc = acc + jnp.dot(wc_ref[t], xp16_ref[:, t:t + N],
                            preferred_element_type=jnp.float32)
    acc = acc + conv_b

    # ---- LayerNorm over H -> ReLU ----
    y = jnp.maximum(_layernorm_ax0(acc, ln1_g, ln1_b), 0.0)

    # ---- ResidualConnect: dense -> (+x, exact f32) -> LayerNorm ----
    z = jnp.dot(wd_ref[...], y.astype(jnp.bfloat16),
                preferred_element_type=jnp.float32) + dense_b
    r = _layernorm_ax0(z + xp32_ref[:, PAD:PAD + N], ln2_g, ln2_b)

    # ---- store per batch in native (H, S) layout, skipping the junk gap columns ----
    for b in range(nb):
        out_ref[b] = r[:, b * band:b * band + S].astype(out_ref.dtype)


def prepare_params(conv_w, conv_b, ln1_g, ln1_b, dense_w, dense_b, ln2_g, ln2_b):
    """PyTorch-layout parameters -> kernel layout.

    Conv1d.weight (H_out, H_in, K) -> (K, H_out, H_in) bf16 (per-tap MXU LHS).
    Linear.weight (H_out, H_in)    -> used as-is (bf16 MXU LHS in channels-major layout).
    The six per-H vectors are packed into one (H, 8) f32 array.
    """
    wc = jnp.transpose(conv_w, (2, 0, 1)).astype(jnp.bfloat16)
    wd = dense_w.astype(jnp.bfloat16)
    zeros = jnp.zeros_like(conv_b)
    vecs = jnp.stack([conv_b, ln1_g, ln1_b, dense_b, ln2_g, ln2_b, zeros, zeros],
                     axis=1).astype(jnp.float32)          # (H, 8)
    return wc, wd, vecs


def _vmem_limit_bytes():
    """Per-generation VMEM budget: 80% of reported capacity (headroom for Mosaic internals)."""
    try:
        cap = int(pltpu.get_tpu_info().vmem_capacity_bytes)
    except Exception:
        cap = 64 * 1024 * 1024   # assume the smallest (v7x per-core) if the query is unavailable
    return int(cap * 0.8)


def _pick_nb(batch, seq, hidden, vmem_budget):
    """Batches folded per grid step (into the matmul N/lane dim).

    Targets ~512 banded lanes per step for MXU fill / per-step overhead amortization, but is
    capped at B//2 so the 'parallel' grid axis always has >=2 steps (v7x has 2 TensorCores),
    and by a rough per-batch VMEM estimate (blocks double-buffered + scratches + f32 slabs).
    """
    weight_bytes = (K + 1) * hidden * hidden * 2 * 2 + 8 * hidden * 4 * 2
    per_batch = 40 * hidden * (seq + 2 * PAD)
    fit = max(1, (vmem_budget - weight_bytes) // per_batch)
    target = max(1, -(-512 // seq))
    par_cap = max(1, batch // 2)
    want = min(target, fit, par_cap, batch)
    nb = 1
    for d in range(1, batch + 1):
        if batch % d == 0 and d <= want:
            nb = d
    return nb


@jax.jit
def conv1d_7gram(x_bhs, kparams):
    """x_bhs: (B, H, S) exactly like the PyTorch module; returns (B, H, S)."""
    wc, wd, vecs = kparams
    B, H, S = x_bhs.shape
    budget = _vmem_limit_bytes()
    nb = _pick_nb(B, S, H, budget)
    band = S + 2 * PAD

    return pl.pallas_call(
        conv7_kernel,
        out_shape=jax.ShapeDtypeStruct((B, H, S), x_bhs.dtype),
        grid=(B // nb,),
        in_specs=[
            pl.BlockSpec((nb, H, S), lambda i: (i, 0, 0)),   # activations, native layout
            pl.BlockSpec((K, H, H), lambda i: (0, 0, 0)),    # conv weights (constant index)
            pl.BlockSpec((H, H), lambda i: (0, 0)),          # dense weight (constant index)
            pl.BlockSpec((H, 8), lambda i: (0, 0)),          # packed bias/gamma/beta vectors
        ],
        out_specs=pl.BlockSpec((nb, H, S), lambda i: (i, 0, 0)),
        scratch_shapes=[
            pltpu.VMEM((H, nb * band), jnp.float32),         # padded f32 activations (residual)
            pltpu.VMEM((H, nb * band), jnp.bfloat16),        # same, bf16 MXU operand
        ],
        compiler_params=pltpu.CompilerParams(
            dimension_semantics=("parallel",),
            vmem_limit_bytes=budget),
    )(x_bhs, wc, wd, vecs)


# ---------------- pure-JAX reference (PyTorch layouts, f32 HIGHEST precision) ----------------
def _ln_ref(y, g, b):
    mu = jnp.mean(y, axis=-1, keepdims=True)
    var = jnp.mean((y - mu) ** 2, axis=-1, keepdims=True)
    return (y - mu) / jnp.sqrt(var + LN_EPS) * g + b


def reference(x_bhs, pt_params):
    conv_w, conv_b, ln1_g, ln1_b, dense_w, dense_b, ln2_g, ln2_b = pt_params
    x = x_bhs.astype(jnp.float32)
    y = lax.conv_general_dilated(x, conv_w.astype(jnp.float32),
                                 window_strides=(1,), padding=[(PAD, PAD)],
                                 dimension_numbers=('NCH', 'OIH', 'NCH'),
                                 precision=lax.Precision.HIGHEST)
    y = y + conv_b[None, :, None]
    y = jnp.transpose(y, (0, 2, 1))                              # (B, S, H)
    y = jnp.maximum(_ln_ref(y, ln1_g, ln1_b), 0.0)
    z = jnp.einsum('bsh,oh->bso', y, dense_w,
                   precision=lax.Precision.HIGHEST) + dense_b
    r = _ln_ref(z + jnp.transpose(x, (0, 2, 1)), ln2_g, ln2_b)
    return jnp.transpose(r, (0, 2, 1))


if __name__ == "__main__":
    B, H, S = 2, 128, 16                     # small shapes: batch=2, hidden=128, seq=16
    key = jax.random.PRNGKey(0)
    ks = jax.random.split(key, 9)
    scale = 0.05

    x = jax.random.normal(ks[0], (B, H, S), jnp.float32)                 # (B, hidden, seq)
    conv_w = jax.random.normal(ks[1], (H, H, K), jnp.float32) * scale    # PyTorch (out, in, k)
    conv_b = jax.random.normal(ks[2], (H,), jnp.float32) * scale
    ln1_g = 1.0 + 0.1 * jax.random.normal(ks[3], (H,), jnp.float32)
    ln1_b = 0.1 * jax.random.normal(ks[4], (H,), jnp.float32)
    dense_w = jax.random.normal(ks[5], (H, H), jnp.float32) * scale      # PyTorch (out, in)
    dense_b = jax.random.normal(ks[6], (H,), jnp.float32) * scale
    ln2_g = 1.0 + 0.1 * jax.random.normal(ks[7], (H,), jnp.float32)
    ln2_b = 0.1 * jax.random.normal(ks[8], (H,), jnp.float32)
    pt_params = (conv_w, conv_b, ln1_g, ln1_b, dense_w, dense_b, ln2_g, ln2_b)

    kparams = prepare_params(*pt_params)

    out = jax.block_until_ready(conv1d_7gram(x, kparams))
    ref = jax.block_until_ready(reference(x, pt_params))

    assert out.shape == (B, H, S), out.shape
    assert bool(jnp.all(jnp.isfinite(out)))
    max_err = float(jnp.max(jnp.abs(out - ref)))
    # bf16 MXU operands vs an f32 HIGHEST-precision reference -> small, bounded drift
    # (residual path and LayerNorm statistics are exact f32 two-pass).
    assert bool(jnp.allclose(out, ref, atol=3e-2, rtol=3e-2)), max_err
    print("KERNEL_OK")
</pallas_src>

<mosaic_0001>
module attributes {stable_mosaic.version = 11 : i64} {
  func.func @conv7_kernel(%arg0: i32, %arg1: memref<1x128x16xf32, #tpu.memory_space<vmem>>, %arg2: memref<7x128x128xbf16, #tpu.memory_space<vmem>>, %arg3: memref<128x128xbf16, #tpu.memory_space<vmem>>, %arg4: memref<128x8xf32, #tpu.memory_space<vmem>>, %arg5: memref<1x128x16xf32, #tpu.memory_space<vmem>>, %arg6: memref<128x22xf32, #tpu.memory_space<vmem>>, %arg7: memref<128x22xbf16, #tpu.memory_space<vmem>>) attributes {dimension_semantics = [#tpu.dimension_semantics<parallel>], iteration_bounds = array<i64: 2>, scalar_prefetch = 0 : i64, scratch_operands = 2 : i64, tpu.core_type = #tpu.core_type<tc>, window_params = [{transform_indices = @transform_0, window_bounds = array<i64: 1, 128, 16>}, {pipeline_mode = #tpu.pipeline_mode<synchronous>, transform_indices = @transform_1, window_bounds = array<i64: 7, 128, 128>}, {pipeline_mode = #tpu.pipeline_mode<synchronous>, transform_indices = @transform_2, window_bounds = array<i64: 128, 128>}, {pipeline_mode = #tpu.pipeline_mode<synchronous>, transform_indices = @transform_3, window_bounds = array<i64: 128, 8>}, {transform_indices = @transform_4, window_bounds = array<i64: 1, 128, 16>}]} {
    %cst = arith.constant 0.000000e+00 : f32
    %0 = vector.broadcast %cst : f32 to vector<128x3xf32>
    %c0 = arith.constant 0 : index
    %c0_0 = arith.constant 0 : index
    %1 = vector.load %arg6[%c0, %c0_0] : memref<128x22xf32, #tpu.memory_space<vmem>>, vector<128x3xf32>
    tpu.vector_store %arg6[%c0, %c0_0], %0 {strides = array<i32>} : memref<128x22xf32, #tpu.memory_space<vmem>>, vector<128x3xf32>,
    %c0_1 = arith.constant 0 : index
    %c0_2 = arith.constant 0 : index
    %c0_3 = arith.constant 0 : index
    %2 = vector.load %arg1[%c0_1, %c0_2, %c0_3] : memref<1x128x16xf32, #tpu.memory_space<vmem>>, vector<1x128x16xf32>
    %3 = vector.shape_cast %2 : vector<1x128x16xf32> to vector<128x16xf32>
    %c0_4 = arith.constant 0 : index
    %c3 = arith.constant 3 : index
    %4 = vector.load %arg6[%c0_4, %c3] : memref<128x22xf32, #tpu.memory_space<vmem>>, vector<128x16xf32>
    tpu.vector_store %arg6[%c0_4, %c3], %3 {strides = array<i32>} : memref<128x22xf32, #tpu.memory_space<vmem>>, vector<128x16xf32>,
    %c0_5 = arith.constant 0 : index
    %c19 = arith.constant 19 : index
    %5 = vector.load %arg6[%c0_5, %c19] : memref<128x22xf32, #tpu.memory_space<vmem>>, vector<128x3xf32>
    tpu.vector_store %arg6[%c0_5, %c19], %0 {strides = array<i32>} : memref<128x22xf32, #tpu.memory_space<vmem>>, vector<128x3xf32>,
    %c0_6 = arith.constant 0 : index
    %c0_7 = arith.constant 0 : index
    %6 = vector.load %arg6[%c0_6, %c0_7] : memref<128x22xf32, #tpu.memory_space<vmem>>, vector<128x22xf32>
    %7 = arith.truncf %6 : vector<128x22xf32> to vector<128x22xbf16>
    %c0_8 = arith.constant 0 : index
    %c0_9 = arith.constant 0 : index
    %8 = vector.load %arg7[%c0_8, %c0_9] : memref<128x22xbf16, #tpu.memory_space<vmem>>, vector<128x22xbf16>
    tpu.vector_store %arg7[%c0_8, %c0_9], %7 {strides = array<i32>} : memref<128x22xbf16, #tpu.memory_space<vmem>>, vector<128x22xbf16>,
    %c0_10 = arith.constant 0 : index
    %c0_11 = arith.constant 0 : index
    %9 = vector.load %arg4[%c0_10, %c0_11] : memref<128x8xf32, #tpu.memory_space<vmem>>, vector<128x1xf32>
    %c0_12 = arith.constant 0 : index
    %c1 = arith.constant 1 : index
    %10 = vector.load %arg4[%c0_12, %c1] : memref<128x8xf32, #tpu.memory_space<vmem>>, vector<128x1xf32>
    %c0_13 = arith.constant 0 : index
    %c2 = arith.constant 2 : index
    %11 = vector.load %arg4[%c0_13, %c2] : memref<128x8xf32, #tpu.memory_space<vmem>>, vector<128x1xf32>
    %c0_14 = arith.constant 0 : index
    %c3_15 = arith.constant 3 : index
    %12 = vector.load %arg4[%c0_14, %c3_15] : memref<128x8xf32, #tpu.memory_space<vmem>>, vector<128x1xf32>
    %c0_16 = arith.constant 0 : index
    %c4 = arith.constant 4 : index
    %13 = vector.load %arg4[%c0_16, %c4] : memref<128x8xf32, #tpu.memory_space<vmem>>, vector<128x1xf32>
    %c0_17 = arith.constant 0 : index
    %c5 = arith.constant 5 : index
    %14 = vector.load %arg4[%c0_17, %c5] : memref<128x8xf32, #tpu.memory_space<vmem>>, vector<128x1xf32>
    %c0_18 = arith.constant 0 : index
    %c0_19 = arith.constant 0 : index
    %c0_20 = arith.constant 0 : index
    %15 = vector.load %arg2[%c0_18, %c0_19, %c0_20] : memref<7x128x128xbf16, #tpu.memory_space<vmem>>, vector<1x128x128xbf16>
    %16 = vector.shape_cast %15 : vector<1x128x128xbf16> to vector<128x128xbf16>
    %c0_21 = arith.constant 0 : index
    %c0_22 = arith.constant 0 : index
    %17 = vector.load %arg7[%c0_21, %c0_22] : memref<128x22xbf16, #tpu.memory_space<vmem>>, vector<128x16xbf16>
    %cst_23 = arith.constant dense<0.000000e+00> : vector<128x16xf32>
    %18 = tpu.matmul %16, %17, %cst_23 {dimension_numbers = #tpu.dot_dimension_numbers<[1], [0], [0], [1], [0, 0, 1, 1], [], []>} : vector<128x128xbf16>, vector<128x16xbf16>, vector<128x16xf32> -> vector<128x16xf32>
    %c1_24 = arith.constant 1 : index
    %c0_25 = arith.constant 0 : index
    %c0_26 = arith.constant 0 : index
    %19 = vector.load %arg2[%c1_24, %c0_25, %c0_26] : memref<7x128x128xbf16, #tpu.memory_space<vmem>>, vector<1x128x128xbf16>
    %20 = vector.shape_cast %19 : vector<1x128x128xbf16> to vector<128x128xbf16>
    %c0_27 = arith.constant 0 : index
    %c1_28 = arith.constant 1 : index
    %21 = vector.load %arg7[%c0_27, %c1_28] : memref<128x22xbf16, #tpu.memory_space<vmem>>, vector<128x16xbf16>
    %cst_29 = arith.constant dense<0.000000e+00> : vector<128x16xf32>
    %22 = tpu.matmul %20, %21, %cst_29 {dimension_numbers = #tpu.dot_dimension_numbers<[1], [0], [0], [1], [0, 0, 1, 1], [], []>} : vector<128x128xbf16>, vector<128x16xbf16>, vector<128x16xf32> -> vector<128x16xf32>
    %23 = arith.addf %18, %22 : vector<128x16xf32>
    %c2_30 = arith.constant 2 : index
    %c0_31 = arith.constant 0 : index
    %c0_32 = arith.constant 0 : index
    %24 = vector.load %arg2[%c2_30, %c0_31, %c0_32] : memref<7x128x128xbf16, #tpu.memory_space<vmem>>, vector<1x128x128xbf16>
    %25 = vector.shape_cast %24 : vector<1x128x128xbf16> to vector<128x128xbf16>
    %c0_33 = arith.constant 0 : index
    %c2_34 = arith.constant 2 : index
    %26 = vector.load %arg7[%c0_33, %c2_34] : memref<128x22xbf16, #tpu.memory_space<vmem>>, vector<128x16xbf16>
    %cst_35 = arith.constant dense<0.000000e+00> : vector<128x16xf32>
    %27 = tpu.matmul %25, %26, %cst_35 {dimension_numbers = #tpu.dot_dimension_numbers<[1], [0], [0], [1], [0, 0, 1, 1], [], []>} : vector<128x128xbf16>, vector<128x16xbf16>, vector<128x16xf32> -> vector<128x16xf32>
    %28 = arith.addf %23, %27 : vector<128x16xf32>
    %c3_36 = arith.constant 3 : index
    %c0_37 = arith.constant 0 : index
    %c0_38 = arith.constant 0 : index
    %29 = vector.load %arg2[%c3_36, %c0_37, %c0_38] : memref<7x128x128xbf16, #tpu.memory_space<vmem>>, vector<1x128x128xbf16>
    %30 = vector.shape_cast %29 : vector<1x128x128xbf16> to vector<128x128xbf16>
    %c0_39 = arith.constant 0 : index
    %c3_40 = arith.constant 3 : index
    %31 = vector.load %arg7[%c0_39, %c3_40] : memref<128x22xbf16, #tpu.memory_space<vmem>>, vector<128x16xbf16>
    %cst_41 = arith.constant dense<0.000000e+00> : vector<128x16xf32>
    %32 = tpu.matmul %30, %31, %cst_41 {dimension_numbers = #tpu.dot_dimension_numbers<[1], [0], [0], [1], [0, 0, 1, 1], [], []>} : vector<128x128xbf16>, vector<128x16xbf16>, vector<128x16xf32> -> vector<128x16xf32>
    %33 = arith.addf %28, %32 : vector<128x16xf32>
    %c4_42 = arith.constant 4 : index
    %c0_43 = arith.constant 0 : index
    %c0_44 = arith.constant 0 : index
    %34 = vector.load %arg2[%c4_42, %c0_43, %c0_44] : memref<7x128x128xbf16, #tpu.memory_space<vmem>>, vector<1x128x128xbf16>
    %35 = vector.shape_cast %34 : vector<1x128x128xbf16> to vector<128x128xbf16>
    %c0_45 = arith.constant 0 : index
    %c4_46 = arith.constant 4 : index
    %36 = vector.load %arg7[%c0_45, %c4_46] : memref<128x22xbf16, #tpu.memory_space<vmem>>, vector<128x16xbf16>
    %cst_47 = arith.constant dense<0.000000e+00> : vector<128x16xf32>
    %37 = tpu.matmul %35, %36, %cst_47 {dimension_numbers = #tpu.dot_dimension_numbers<[1], [0], [0], [1], [0, 0, 1, 1], [], []>} : vector<128x128xbf16>, vector<128x16xbf16>, vector<128x16xf32> -> vector<128x16xf32>
    %38 = arith.addf %33, %37 : vector<128x16xf32>
    %c5_48 = arith.constant 5 : index
    %c0_49 = arith.constant 0 : index
    %c0_50 = arith.constant 0 : index
    %39 = vector.load %arg2[%c5_48, %c0_49, %c0_50] : memref<7x128x128xbf16, #tpu.memory_space<vmem>>, vector<1x128x128xbf16>
    %40 = vector.shape_cast %39 : vector<1x128x128xbf16> to vector<128x128xbf16>
    %c0_51 = arith.constant 0 : index
    %c5_52 = arith.constant 5 : index
    %41 = vector.load %arg7[%c0_51, %c5_52] : memref<128x22xbf16, #tpu.memory_space<vmem>>, vector<128x16xbf16>
    %cst_53 = arith.constant dense<0.000000e+00> : vector<128x16xf32>
    %42 = tpu.matmul %40, %41, %cst_53 {dimension_numbers = #tpu.dot_dimension_numbers<[1], [0], [0], [1], [0, 0, 1, 1], [], []>} : vector<128x128xbf16>, vector<128x16xbf16>, vector<128x16xf32> -> vector<128x16xf32>
    %43 = arith.addf %38, %42 : vector<128x16xf32>
    %c6 = arith.constant 6 : index
    %c0_54 = arith.constant 0 : index
    %c0_55 = arith.constant 0 : index
    %44 = vector.load %arg2[%c6, %c0_54, %c0_55] : memref<7x128x128xbf16, #tpu.memory_space<vmem>>, vector<1x128x128xbf16>
    %45 = vector.shape_cast %44 : vector<1x128x128xbf16> to vector<128x128xbf16>
    %c0_56 = arith.constant 0 : index
    %c6_57 = arith.constant 6 : index
    %46 = vector.load %arg7[%c0_56, %c6_57] : memref<128x22xbf16, #tpu.memory_space<vmem>>, vector<128x16xbf16>
    %cst_58 = arith.constant dense<0.000000e+00> : vector<128x16xf32>
    %47 = tpu.matmul %45, %46, %cst_58 {dimension_numbers = #tpu.dot_dimension_numbers<[1], [0], [0], [1], [0, 0, 1, 1], [], []>} : vector<128x128xbf16>, vector<128x16xbf16>, vector<128x16xf32> -> vector<128x16xf32>
    %48 = arith.addf %43, %47 : vector<128x16xf32>
    %49 = vector.broadcast %9 : vector<128x1xf32> to vector<128x16xf32>
    %50 = arith.addf %48, %49 : vector<128x16xf32>
    %cst_59 = arith.constant dense<0.000000e+00> : vector<16xf32>
    %51 = vector.multi_reduction <add>, %50, %cst_59 [0] : vector<128x16xf32> to vector<16xf32>
    %52 = vector.shape_cast %51 : vector<16xf32> to vector<1x16xf32>
    %cst_60 = arith.constant 1.280000e+02 : f32
    %53 = vector.broadcast %cst_60 : f32 to vector<1x16xf32>
    %54 = arith.divf %52, %53 : vector<1x16xf32>
    %55 = vector.broadcast %54 : vector<1x16xf32> to vector<128x16xf32>
    %56 = arith.subf %50, %55 : vector<128x16xf32>
    %57 = arith.mulf %56, %56 : vector<128x16xf32>
    %cst_61 = arith.constant dense<0.000000e+00> : vector<16xf32>
    %58 = vector.multi_reduction <add>, %57, %cst_61 [0] : vector<128x16xf32> to vector<16xf32>
    %59 = vector.shape_cast %58 : vector<16xf32> to vector<1x16xf32>
    %cst_62 = arith.constant 1.280000e+02 : f32
    %60 = vector.broadcast %cst_62 : f32 to vector<1x16xf32>
    %61 = arith.divf %59, %60 : vector<1x16xf32>
    %cst_63 = arith.constant 9.99999974E-6 : f32
    %62 = vector.broadcast %cst_63 : f32 to vector<1x16xf32>
    %63 = arith.addf %61, %62 : vector<1x16xf32>
    %64 = math.rsqrt %63 : vector<1x16xf32>
    %65 = vector.broadcast %64 : vector<1x16xf32> to vector<128x16xf32>
    %66 = arith.mulf %56, %65 : vector<128x16xf32>
    %67 = vector.broadcast %10 : vector<128x1xf32> to vector<128x16xf32>
    %68 = arith.mulf %66, %67 : vector<128x16xf32>
    %69 = vector.broadcast %11 : vector<128x1xf32> to vector<128x16xf32>
    %70 = arith.addf %68, %69 : vector<128x16xf32>
    %cst_64 = arith.constant 0.000000e+00 : f32
    %71 = vector.broadcast %cst_64 : f32 to vector<128x16xf32>
    %72 = arith.maximumf %70, %71 : vector<128x16xf32>
    %c0_65 = arith.constant 0 : index
    %c0_66 = arith.constant 0 : index
    %73 = vector.load %arg3[%c0_65, %c0_66] : memref<128x128xbf16, #tpu.memory_space<vmem>>, vector<128x128xbf16>
    %74 = arith.truncf %72 : vector<128x16xf32> to vector<128x16xbf16>
    %cst_67 = arith.constant dense<0.000000e+00> : vector<128x16xf32>
    %75 = tpu.matmul %73, %74, %cst_67 {dimension_numbers = #tpu.dot_dimension_numbers<[1], [0], [0], [1], [0, 0, 1, 1], [], []>} : vector<128x128xbf16>, vector<128x16xbf16>, vector<128x16xf32> -> vector<128x16xf32>
    %76 = vector.broadcast %12 : vector<128x1xf32> to vector<128x16xf32>
    %77 = arith.addf %75, %76 : vector<128x16xf32>
    %c0_68 = arith.constant 0 : index
    %c3_69 = arith.constant 3 : index
    %78 = vector.load %arg6[%c0_68, %c3_69] : memref<128x22xf32, #tpu.memory_space<vmem>>, vector<128x16xf32>
    %79 = arith.addf %77, %78 : vector<128x16xf32>
    %cst_70 = arith.constant dense<0.000000e+00> : vector<16xf32>
    %80 = vector.multi_reduction <add>, %79, %cst_70 [0] : vector<128x16xf32> to vector<16xf32>
    %81 = vector.shape_cast %80 : vector<16xf32> to vector<1x16xf32>
    %cst_71 = arith.constant 1.280000e+02 : f32
    %82 = vector.broadcast %cst_71 : f32 to vector<1x16xf32>
    %83 = arith.divf %81, %82 : vector<1x16xf32>
    %84 = vector.broadcast %83 : vector<1x16xf32> to vector<128x16xf32>
    %85 = arith.subf %79, %84 : vector<128x16xf32>
    %86 = arith.mulf %85, %85 : vector<128x16xf32>
    %cst_72 = arith.constant dense<0.000000e+00> : vector<16xf32>
    %87 = vector.multi_reduction <add>, %86, %cst_72 [0] : vector<128x16xf32> to vector<16xf32>
    %88 = vector.shape_cast %87 : vector<16xf32> to vector<1x16xf32>
    %cst_73 = arith.constant 1.280000e+02 : f32
    %89 = vector.broadcast %cst_73 : f32 to vector<1x16xf32>
    %90 = arith.divf %88, %89 : vector<1x16xf32>
    %cst_74 = arith.constant 9.99999974E-6 : f32
    %91 = vector.broadcast %cst_74 : f32 to vector<1x16xf32>
    %92 = arith.addf %90, %91 : vector<1x16xf32>
    %93 = math.rsqrt %92 : vector<1x16xf32>
    %94 = vector.broadcast %93 : vector<1x16xf32> to vector<128x16xf32>
    %95 = arith.mulf %85, %94 : vector<128x16xf32>
    %96 = vector.broadcast %13 : vector<128x1xf32> to vector<128x16xf32>
    %97 = arith.mulf %95, %96 : vector<128x16xf32>
    %98 = vector.broadcast %14 : vector<128x1xf32> to vector<128x16xf32>
    %99 = arith.addf %97, %98 : vector<128x16xf32>
    %c0_75 = arith.constant 0 : index
    %c0_76 = arith.constant 0 : index
    %c0_77 = arith.constant 0 : index
    %100 = vector.load %arg5[%c0_75, %c0_76, %c0_77] : memref<1x128x16xf32, #tpu.memory_space<vmem>>, vector<1x128x16xf32>
    %101 = vector.shape_cast %100 : vector<1x128x16xf32> to vector<128x16xf32>
    %102 = vector.shape_cast %99 : vector<128x16xf32> to vector<1x128x16xf32>
    tpu.vector_store %arg5[%c0_75, %c0_76, %c0_77], %102 {strides = array<i32>} : memref<1x128x16xf32, #tpu.memory_space<vmem>>, vector<1x128x16xf32>,
    return
  }
  func.func @transform_0(%arg0: i32) -> (i32, i32, i32) {
    %c0_i32 = arith.constant 0 : i32
    %c0_i32_0 = arith.constant 0 : i32
    %c0_i32_1 = arith.constant 0 : i32
    return %arg0, %c0_i32, %c0_i32_0 : i32, i32, i32
  }
  func.func @transform_1(%arg0: i32) -> (i32, i32, i32) {
    %c0_i32 = arith.constant 0 : i32
    %c0_i32_0 = arith.constant 0 : i32
    %c0_i32_1 = arith.constant 0 : i32
    %c0_i32_2 = arith.constant 0 : i32
    return %c0_i32, %c0_i32_0, %c0_i32_1 : i32, i32, i32
  }
  func.func @transform_2(%arg0: i32) -> (i32, i32) {
    %c0_i32 = arith.constant 0 : i32
    %c0_i32_0 = arith.constant 0 : i32
    %c0_i32_1 = arith.constant 0 : i32
    return %c0_i32, %c0_i32_0 : i32, i32
  }
  func.func @transform_3(%arg0: i32) -> (i32, i32) {
    %c0_i32 = arith.constant 0 : i32
    %c0_i32_0 = arith.constant 0 : i32
    %c0_i32_1 = arith.constant 0 : i32
    return %c0_i32, %c0_i32_0 : i32, i32
  }
  func.func @transform_4(%arg0: i32) -> (i32, i32, i32) {
    %c0_i32 = arith.constant 0 : i32
    %c0_i32_0 = arith.constant 0 : i32
    %c0_i32_1 = arith.constant 0 : i32
    return %arg0, %c0_i32, %c0_i32_0 : i32, i32, i32
  }
}

</mosaic_0001>

<bundles_post_ra>
// kernel: conv1d_7gram.1
= control target key start
LH: loop header
LB: loop body
LE: loop exit
PB: predicated region body
PF: predicated region fallthrough
CT: control target
= control target key end

     0   :  { %9 = vsyncpa [#allocation5], 0  ;;  %s3106_s15 = smov 0   ;;  %s4182_s0 = inlined_call_operand.vmem [shape: f32[2,128,16], index: 0, kind: input, shape index: {}]   ;;  %s4183_s1 = inlined_call_operand.hbm [shape: bf16[7,128,128], index: 1, kind: input, shape index: {}]   ;;  %s4184_s2 = inlined_call_operand.vmem [shape: bf16[128,128], index: 2, kind: input, shape index: {}]   ;;  %s4185_s3 = inlined_call_operand.vmem [shape: f32[128,8], index: 3, kind: input, shape index: {}]   ;;  %s4186_s4 = inlined_call_operand.vmem [shape: f32[2,128,16], index: 4, kind: output, shape index: {}]  }
   0x1 LB: > { %s146_s18 = sshll.u32 %s4183_s1, 4  ;;  %s2570_s19 = sadd.s32 4294967295, %s3061_s15   ;;  %s3061_s15 = sphi %s3106_s15, %s15_s15   ;;  %s147_s18 = int_to_ptr.hbm [resolvable:$true] %s146_s18 }
   0x2   : > { %p2572_p0 = scmp.ge.s32.totalorder %s3061_s15, 1  ;;  %p135_p1 = scmp.lt.s32.totalorder %s3061_s15, 3 }
   0x3   : > { %p2953_p2 = scmp.eq.s32.totalorder %s2570_s19, 0  ;;  %s3063_s20 = smov [#allocation4]  }
   0x4   : > { %p136_p3 = pnand %p2572_p0, %p135_p1  ;;  %s148_s21 = sshll.u32 %s3063_s20, 4  ;;  %s149_s21 = int_to_ptr.vmem [resolvable:$true] %s148_s21 }
   0x5   : > { %s3064_s22 = smov 64   ;;  %s3065_s23 = smov 4  }
   0x6   : > { %p2949_p4 = pneg %p136_p3  ;;  %178 = sbr.rel (%p136_p3) target bundleno = 1197 (0x4ad), region = 36 }
   0x8   : > { %p2950_p5 = pnand %p2953_p2, %p2949_p4 }
   0xa   : > { %2952 = dma.hbm_to_vmem [thread:$0]  (!%p2950_p5), %s147_s18, 7168, %s149_s21, [#allocation5], %s3064_s22, %s3064_s22, %s3065_s23  }
   0xb   : > { %3056 = dma.done.wait (%p2953_p2), [#allocation5], 7168  }
   0xc   : > { %3058 = vsyncadd (%p2953_p2), [#allocation5], 4294960128  ;;  %p205_p6 = scmp.lt.s32.totalorder %s2570_s19, 1  ;;  %s3066_s28 = smov 3   ;;  %vm215_vm0 = vcmask 23552   ;;  %v3067_v6 = vmov 0.0  }
   0xd   : > { %230 = vst.msk [vmem:[#allocation2 + $0x70] sm:$0xff] %vm215_vm0, %v3067_v6  ;;  %vm312_vm1 = vcmask 154648   ;;  %vm329_vm2 = vcmask 179352   ;;  %vm378_vm3 = vcmask 175104   ;;  %s3068_s29 = smov 126   ;;  %s3069_s30 = smov 127  }
   0xe   : > { %s4188_s19 = smov (!%p205_p6, %s2570_s19), 1  ;;  %216 = vst.msk [vmem:[#allocation2] sm:$0xff] %vm215_vm0, %v3067_v6  ;;  %s3070_s5 = smov 125   ;;  %vm1592_vm4 = vcmask 130048  }
   0xf   : > { %s2871_s24 = sshll.u32 %s4188_s19, 7  ;;  %217 = vst.msk [vmem:[#allocation2 + $0x8] sm:$0xff] %vm215_vm0, %v3067_v6  ;;  %s3071_s6 = smov 122  }
  0x10   : > { %s3125_s27 = scalar_lea.vmem %s4182_s0, %s2871_s24  ;;  %218 = vst.msk [vmem:[#allocation2 + $0x10] sm:$0xff] %vm215_vm0, %v3067_v6  ;;  %s3072_s7 = smov 124  }
  0x11   : > { %v246_v0 = vld [vmem:[%s3125_s27 + $0x70] sm:$0xff]  ;;  %v244_v1 = vld [vmem:[%s3125_s27 + $0x60] sm:$0xff]  ;;  %v247_v3 = vld [vmem:[%s3125_s27 + $0x78] sm:$0xff]  ;;  %219 = vst.msk [vmem:[#allocation2 + $0x18] sm:$0xff] %vm215_vm0, %v3067_v6  ;;  %s3073_s8 = smov 123  }
  0x12   : > { %292 = vrot.lane.b32.xlu0 %v246_v0, %s3066_s28  ;;  %288 = vrot.lane.b32.xlu1 %v244_v1, %s3066_s28  ;;  %v242_v2 = vld [vmem:[%s3125_s27 + $0x50] sm:$0xff]  ;;  %v245_v4 = vld [vmem:[%s3125_s27 + $0x68] sm:$0xff]  ;;  %220 = vst.msk [vmem:[#allocation2 + $0x20] sm:$0xff] %vm215_vm0, %v3067_v6 }
  0x13   : > { %284 = vrot.lane.b32.xlu2 %v242_v2, %s3066_s28  ;;  %v243_v5 = vld [vmem:[%s3125_s27 + $0x58] sm:$0xff]  ;;  %v240_v7 = vld [vmem:[%s3125_s27 + $0x40] sm:$0xff]  ;;  %v241_v8 = vld [vmem:[%s3125_s27 + $0x48] sm:$0xff]  ;;  %221 = vst.msk [vmem:[#allocation2 + $0x28] sm:$0xff] %vm215_vm0, %v3067_v6 }
  0x14   : > { %v238_v9 = vld [vmem:[%s3125_s27 + $0x30] sm:$0xff]  ;;  %222 = vst.msk [vmem:[#allocation2 + $0x30] sm:$0xff] %vm215_vm0, %v3067_v6  ;;  %v239_v10 = vld [vmem:[%s3125_s27 + $0x38] sm:$0xff]  ;;  %v236_v11 = vld [vmem:[%s3125_s27 + $0x20] sm:$0xff] }
  0x15   : > { %223 = vst.msk [vmem:[#allocation2 + $0x38] sm:$0xff] %vm215_vm0, %v3067_v6  ;;  %v237_v12 = vld [vmem:[%s3125_s27 + $0x28] sm:$0xff]  ;;  %v234_v13 = vld [vmem:[%s3125_s27 + $0x10] sm:$0xff]  ;;  %v235_v14 = vld [vmem:[%s3125_s27 + $0x18] sm:$0xff] }
  0x16   : > { %224 = vst.msk [vmem:[#allocation2 + $0x40] sm:$0xff] %vm215_vm0, %v3067_v6  ;;  %v232_v15 = vld [vmem:[%s3125_s27] sm:$0xff]  ;;  %v233_v16 = vld [vmem:[%s3125_s27 + $0x8] sm:$0xff]  ;;  %s4123_s27 = scalar_lea.vmem %s4186_s4, %s2871_s24 }
  0x17   : > { %225 = vst.msk [vmem:[#allocation2 + $0x48] sm:$0xff] %vm215_vm0, %v3067_v6 }
  0x18   : > { %226 = vst.msk [vmem:[#allocation2 + $0x50] sm:$0xff] %vm215_vm0, %v3067_v6 }
  0x19   : > { %227 = vst.msk [vmem:[#allocation2 + $0x58] sm:$0xff] %vm215_vm0, %v3067_v6 }
  0x1a   : > { %294 = vrot.lane.b32.xlu0 %v247_v3, %s3066_s28  ;;  %290 = vrot.lane.b32.xlu1 %v245_v4, %s3066_s28  ;;  %228 = vst.msk [vmem:[#allocation2 + $0x60] sm:$0xff] %vm215_vm0, %v3067_v6 }
  0x1b   : > { %286 = vrot.lane.b32.xlu2 %v243_v5, %s3066_s28  ;;  %229 = vst.msk [vmem:[#allocation2 + $0x68] sm:$0xff] %vm215_vm0, %v3067_v6 }
  0x1c   : > { %231 = vst.msk [vmem:[#allocation2 + $0x78] sm:$0xff] %vm215_vm0, %v3067_v6 }
  0x22   : > { %280 = vrot.lane.b32.xlu0 %v240_v7, %s3066_s28  ;;  %282 = vrot.lane.b32.xlu1 %v241_v8, %s3066_s28 }
  0x23   : > { %276 = vrot.lane.b32.xlu2 %v238_v9, %s3066_s28 }
  0x2a   : > { %278 = vrot.lane.b32.xlu0 %v239_v10, %s3066_s28  ;;  %272 = vrot.lane.b32.xlu1 %v236_v11, %s3066_s28 }
  0x2b   : > { %274 = vrot.lane.b32.xlu2 %v237_v12, %s3066_s28 }
  0x32   : > { %268 = vrot.lane.b32.xlu0 %v234_v13, %s3066_s28  ;;  %270 = vrot.lane.b32.xlu1 %v235_v14, %s3066_s28 }
  0x33   : > { %264 = vrot.lane.b32.xlu2 %v232_v15, %s3066_s28  ;;  %v2873_v15 = vld [vmem:[#allocation4] sm:$0xff] }
  0x3a   : > { %266 = vrot.lane.b32.xlu0 %v233_v16, %s3066_s28 }
  0x6d   : > { %v285_v17 = vpop.permute.xlu2 %284 }
  0x6e   : > { %323 = vst.msk [vmem:[#allocation2 + $0x50] sm:$0xff] %vm312_vm1, %v285_v17 }
  0x6f   : > { %340 = vst.msk [vmem:[#allocation2 + $0x50] sm:$0xff] %vm329_vm2, %v3067_v6 }
  0x75   : > { %v287_v18 = vpop.permute.xlu2 %286 }
  0x76   : > { %324 = vst.msk [vmem:[#allocation2 + $0x58] sm:$0xff] %vm312_vm1, %v287_v18  ;;  %v356_v19 = vld [vmem:[#allocation2 + $0x50] sm:$0xff] }
  0x77   : > { %341 = vst.msk [vmem:[#allocation2 + $0x58] sm:$0xff] %vm329_vm2, %v3067_v6  ;;  %v372_v20 = vpack.c.bf16 %v356_v19, %v356_v19 }
  0x79   : > { %389 = vst.msk [vmem:[#allocation3 + $0x28] sm:$0xf] %vm378_vm3, %v372_v20 }
  0x7d   : > { %v277_v21 = vpop.permute.xlu2 %276 }
  0x7e   : > { %v357_v22 = vld [vmem:[#allocation2 + $0x58] sm:$0xff]  ;;  %319 = vst.msk [vmem:[#allocation2 + $0x30] sm:$0xff] %vm312_vm1, %v277_v21  ;;  %v2874_v21 = vld [vmem:[#allocation4 + $0x8] sm:$0xff] }
  0x7f   : > { %v373_v23 = vpack.c.bf16 %v357_v22, %v357_v22  ;;  %336 = vst.msk [vmem:[#allocation2 + $0x30] sm:$0xff] %vm329_vm2, %v3067_v6 }
  0x81   : > { %390 = vst.msk [vmem:[#allocation3 + $0x2c] sm:$0xf] %vm378_vm3, %v373_v23 }
  0x84   : > { %v293_v24 = vpop.permute.xlu0 %292  ;;  %v289_v25 = vpop.permute.xlu1 %288 }
  0x85   : > { %327 = vst.msk [vmem:[#allocation2 + $0x70] sm:$0xff] %vm312_vm1, %v293_v24  ;;  %v275_v26 = vpop.permute.xlu2 %274 }
  0x86   : > { %344 = vst.msk [vmem:[#allocation2 + $0x70] sm:$0xff] %vm329_vm2, %v3067_v6  ;;  %v352_v27 = vld [vmem:[#allocation2 + $0x30] sm:$0xff] }
  0x87   : > { %325 = vst.msk [vmem:[#allocation2 + $0x60] sm:$0xff] %vm312_vm1, %v289_v25  ;;  %v368_v28 = vpack.c.bf16 %v352_v27, %v352_v27  ;;  %v2875_v27 = vld [vmem:[#allocation4 + $0x10] sm:$0xff] }
  0x88   : > { %342 = vst.msk [vmem:[#allocation2 + $0x60] sm:$0xff] %vm329_vm2, %v3067_v6  ;;  %v2886_v58 = vld [vmem:[#allocation3 + $0x28] sm:$0xff] }
  0x89   : > { %318 = vst.msk [vmem:[#allocation2 + $0x28] sm:$0xff] %vm312_vm1, %v275_v26 }
  0x8a   : > { %335 = vst.msk [vmem:[#allocation2 + $0x28] sm:$0xff] %vm329_vm2, %v3067_v6 }
  0x8b   : > { %385 = vst.msk [vmem:[#allocation3 + $0x18] sm:$0xf] %vm378_vm3, %v368_v28 }
  0x8c   : > { %v295_v29 = vpop.permute.xlu0 %294  ;;  %v291_v30 = vpop.permute.xlu1 %290 }
  0x8d   : > { %v360_v31 = vld [vmem:[#allocation2 + $0x70] sm:$0xff]  ;;  %328 = vst.msk [vmem:[#allocation2 + $0x78] sm:$0xff] %vm312_vm1, %v295_v29  ;;  %v265_v35 = vpop.permute.xlu2 %264  ;;  %v2897_v29 = vld [vmem:[#allocation4 + $0x80] sm:$0xff] }
  0x8e   : > { %v376_v32 = vpack.c.bf16 %v360_v31, %v360_v31  ;;  %345 = vst.msk [vmem:[#allocation2 + $0x78] sm:$0xff] %vm329_vm2, %v3067_v6  ;;  %v2889_v31 = vld [vmem:[#allocation4 + $0x40] sm:$0xff] }
  0x8f   : > { %v358_v33 = vld [vmem:[#allocation2 + $0x60] sm:$0xff]  ;;  %326 = vst.msk [vmem:[#allocation2 + $0x68] sm:$0xff] %vm312_vm1, %v291_v30 }
  0x90   : > { %393 = vst.msk [vmem:[#allocation3 + $0x38] sm:$0xf] %vm378_vm3, %v376_v32  ;;  %v374_v34 = vpack.c.bf16 %v358_v33, %v358_v33 }
  0x91   : > { %343 = vst.msk [vmem:[#allocation2 + $0x68] sm:$0xff] %vm329_vm2, %v3067_v6  ;;  %v351_v36 = vld [vmem:[#allocation2 + $0x28] sm:$0xff] }
  0x92   : > { %391 = vst.msk [vmem:[#allocation3 + $0x30] sm:$0xf] %vm378_vm3, %v374_v34  ;;  %v367_v37 = vpack.c.bf16 %v351_v36, %v351_v36 }
  0x93   : > { %313 = vst.msk [vmem:[#allocation2] sm:$0xff] %vm312_vm1, %v265_v35  ;;  %v2876_v35 = vld [vmem:[#allocation4 + $0x18] sm:$0xff] }
  0x94   : > { %v281_v38 = vpop.permute.xlu0 %280  ;;  %v283_v39 = vpop.permute.xlu1 %282  ;;  %384 = vst.msk [vmem:[#allocation3 + $0x14] sm:$0xf] %vm378_vm3, %v367_v37  ;;  %v2898_v37 = vld [vmem:[#allocation4 + $0x88] sm:$0xff] }
  0x95   : > { %v361_v40 = vld [vmem:[#allocation2 + $0x78] sm:$0xff]  ;;  %321 = vst.msk [vmem:[#allocation2 + $0x40] sm:$0xff] %vm312_vm1, %v281_v38 }
  0x96   : > { %v377_v41 = vpack.c.bf16 %v361_v40, %v361_v40  ;;  %338 = vst.msk [vmem:[#allocation2 + $0x40] sm:$0xff] %vm329_vm2, %v3067_v6  ;;  %v2890_v40 = vld [vmem:[#allocation4 + $0x48] sm:$0xff] }
  0x97   : > { %322 = vst.msk [vmem:[#allocation2 + $0x48] sm:$0xff] %vm312_vm1, %v283_v39 }
  0x98   : > { %394 = vst.msk [vmem:[#allocation3 + $0x3c] sm:$0xf] %vm378_vm3, %v377_v41  ;;  %v359_v42 = vld [vmem:[#allocation2 + $0x68] sm:$0xff] }
  0x99   : > { %v375_v43 = vpack.c.bf16 %v359_v42, %v359_v42  ;;  %339 = vst.msk [vmem:[#allocation2 + $0x48] sm:$0xff] %vm329_vm2, %v3067_v6 }
  0x9a   : > { %330 = vst.msk [vmem:[#allocation2] sm:$0xff] %vm329_vm2, %v3067_v6 }
  0x9b   : > { %392 = vst.msk [vmem:[#allocation3 + $0x34] sm:$0xf] %vm378_vm3, %v375_v43 }
  0x9c   : > { %v279_v44 = vpop.permute.xlu0 %278  ;;  %v273_v45 = vpop.permute.xlu1 %272 }
  0x9d   : > { %v354_v46 = vld [vmem:[#allocation2 + $0x40] sm:$0xff]  ;;  %320 = vst.msk [vmem:[#allocation2 + $0x38] sm:$0xff] %vm312_vm1, %v279_v44 }
  0x9e   : > { %v370_v47 = vpack.c.bf16 %v354_v46, %v354_v46  ;;  %337 = vst.msk [vmem:[#allocation2 + $0x38] sm:$0xff] %vm329_vm2, %v3067_v6  ;;  %v2877_v44 = vld [vmem:[#allocation4 + $0x20] sm:$0xff]  ;;  %v2899_v46 = vld [vmem:[#allocation4 + $0x90] sm:$0xff] }
  0x9f   : > { %v3235_v48 = vld [vmem:[#allocation3 + $0x38] sm:$0xff]  ;;  %317 = vst.msk [vmem:[#allocation2 + $0x20] sm:$0xff] %vm312_vm1, %v273_v45 }
  0xa0   : > { %387 = vst.msk [vmem:[#allocation3 + $0x20] sm:$0xf] %vm378_vm3, %v370_v47  ;;  %v355_v49 = vld [vmem:[#allocation2 + $0x48] sm:$0xff]  ;;  %805 = vrot.lane.b32.xlu1 %v3235_v48, %s3068_s29  ;;  %562 = vrot.lane.b32.xlu2 %v3235_v48, %s3069_s30 }
  0xa1   : > { %v371_v50 = vpack.c.bf16 %v355_v49, %v355_v49  ;;  %334 = vst.msk [vmem:[#allocation2 + $0x20] sm:$0xff] %vm329_vm2, %v3067_v6  ;;  %v346_v51 = vld [vmem:[#allocation2] sm:$0xff]  ;;  %677 = vmatpush.bf16.msra.mxu1 %v3235_v48 }
  0xa2   : > { %v3245_v52 = vld [vmem:[#allocation3 + $0x30] sm:$0xff]  ;;  %v362_v53 = vpack.c.bf16 %v346_v51, %v346_v51 }
  0xa3   : > { %388 = vst.msk [vmem:[#allocation3 + $0x24] sm:$0xf] %vm378_vm3, %v371_v50  ;;  %803 = vrot.lane.b32.xlu0 %v3245_v52, %s3068_s29 }
  0xa4   : > { %v269_v54 = vpop.permute.xlu0 %268  ;;  %v271_v55 = vpop.permute.xlu1 %270  ;;  %379 = vst.msk [vmem:[#allocation3] sm:$0xf] %vm378_vm3, %v362_v53 }
  0xa5   : > { %v353_v56 = vld [vmem:[#allocation2 + $0x38] sm:$0xff]  ;;  %315 = vst.msk [vmem:[#allocation2 + $0x10] sm:$0xff] %vm312_vm1, %v269_v54  ;;  %678 = vmatpush.bf16.msra.mxu1 %v3245_v52 }
  0xa6   : > { %v369_v57 = vpack.c.bf16 %v353_v56, %v353_v56  ;;  %332 = vst.msk [vmem:[#allocation2 + $0x10] sm:$0xff] %vm329_vm2, %v3067_v6  ;;  %v2900_v54 = vld [vmem:[#allocation4 + $0x98] sm:$0xff] }
  0xa7   : > { %316 = vst.msk [vmem:[#allocation2 + $0x18] sm:$0xff] %vm312_vm1, %v271_v55  ;;  %v2892_v56 = vld [vmem:[#allocation4 + $0x58] sm:$0xff] }
  0xa8   : > { %386 = vst.msk [vmem:[#allocation3 + $0x1c] sm:$0xf] %vm378_vm3, %v369_v57  ;;  %v350_v59 = vld [vmem:[#allocation2 + $0x20] sm:$0xff]  ;;  %560 = vrot.lane.b32.xlu1 %v3245_v52, %s3069_s30  ;;  %801 = vrot.lane.b32.xlu2 %v2886_v58, %s3068_s29 }
  0xa9   : > { %v366_v60 = vpack.c.bf16 %v350_v59, %v350_v59  ;;  %333 = vst.msk [vmem:[#allocation2 + $0x18] sm:$0xff] %vm329_vm2, %v3067_v6  ;;  %679 = vmatpush.bf16.msra.mxu1 %v2886_v58 }
  0xaa   : > { %v2885_v62 = vld [vmem:[#allocation3 + $0x20] sm:$0xff] }
  0xab   : > { %383 = vst.msk [vmem:[#allocation3 + $0x10] sm:$0xf] %vm378_vm3, %v366_v60  ;;  %558 = vrot.lane.b32.xlu0 %v2886_v58, %s3069_s30  ;;  %v2879_v60 = vld [vmem:[#allocation4 + $0x30] sm:$0xff] }
  0xac   : > { %v267_v61 = vpop.permute.xlu0 %266 }
  0xad   : > { %v348_v63 = vld [vmem:[#allocation2 + $0x10] sm:$0xff]  ;;  %314 = vst.msk [vmem:[#allocation2 + $0x8] sm:$0xff] %vm312_vm1, %v267_v61  ;;  %680 = vmatpush.bf16.msra.mxu1 %v2885_v62  ;;  %v2901_v61 = vld [vmem:[#allocation4 + $0xa0] sm:$0xff] }
  0xae   : > { %v364_v0 = vpack.c.bf16 %v348_v63, %v348_v63  ;;  %331 = vst.msk [vmem:[#allocation2 + $0x8] sm:$0xff] %vm329_vm2, %v3067_v6  ;;  %v2893_v63 = vld [vmem:[#allocation4 + $0x60] sm:$0xff] }
  0xaf   : > { %v2884_v2 = vld [vmem:[#allocation3 + $0x18] sm:$0xff] }
  0xb0   : > { %381 = vst.msk [vmem:[#allocation3 + $0x8] sm:$0xf] %vm378_vm3, %v364_v0  ;;  %v349_v1 = vld [vmem:[#allocation2 + $0x18] sm:$0xff]  ;;  %799 = vrot.lane.b32.xlu1 %v2885_v62, %s3068_s29  ;;  %556 = vrot.lane.b32.xlu2 %v2885_v62, %s3069_s30  ;;  %v2905_v0 = vld [vmem:[#allocation4 + $0xc0] sm:$0xff] }
  0xb1   : > { %v365_v3 = vpack.c.bf16 %v349_v1, %v349_v1  ;;  %681 = vmatpush.bf16.msra.mxu1 %v2884_v2 }
  0xb2   : > { %v2883_v4 = vld [vmem:[#allocation3 + $0x10] sm:$0xff] }
  0xb3   : > { %382 = vst.msk [vmem:[#allocation3 + $0xc] sm:$0xf] %vm378_vm3, %v365_v3  ;;  %797 = vrot.lane.b32.xlu0 %v2884_v2, %s3068_s29 }
  0xb5   : > { %v347_v5 = vld [vmem:[#allocation2 + $0x8] sm:$0xff]  ;;  %682 = vmatpush.bf16.msra.mxu1 %v2883_v4 }
  0xb6   : > { %v363_v7 = vpack.c.bf16 %v347_v5, %v347_v5  ;;  %v2902_v5 = vld [vmem:[#allocation4 + $0xa8] sm:$0xff] }
  0xb8   : > { %380 = vst.msk [vmem:[#allocation3 + $0x4] sm:$0xf] %vm378_vm3, %v363_v7  ;;  %554 = vrot.lane.b32.xlu1 %v2884_v2, %s3069_s30  ;;  %795 = vrot.lane.b32.xlu2 %v2883_v4, %s3068_s29 }
  0xba   : > { %v2882_v6 = vld [vmem:[#allocation3 + $0x8] sm:$0xff] }
  0xbb   : > { %552 = vrot.lane.b32.xlu0 %v2883_v4, %s3069_s30  ;;  %683 = vmatpush.bf16.msra.mxu1 %v2882_v6 }
  0xbf   : > { %v2881_v8 = vld [vmem:[#allocation3] sm:$0xff] }
  0xc0   : > { %793 = vrot.lane.b32.xlu1 %v2882_v6, %s3068_s29  ;;  %550 = vrot.lane.b32.xlu2 %v2882_v6, %s3069_s30 }
  0xc1   : > { %684 = vmatpush.bf16.msra.mxu1 %v2881_v8 }
  0xc3   : > { %791 = vrot.lane.b32.xlu0 %v2881_v8, %s3068_s29 }
  0xc4   : > { %685 = vmatmul.bf16.vlgmr.msra.gmra.mxu1 %v2873_v15  ;;  %v2903_v15 = vld [vmem:[#allocation4 + $0xb0] sm:$0xff] }
  0xc8   : > { %548 = vrot.lane.b32.xlu1 %v2881_v8, %s3069_s30  ;;  %959 = vrot.lane.b32.xlu2 %v3235_v48, %s3070_s5 }
  0xcb   : > { %957 = vrot.lane.b32.xlu0 %v3245_v52, %s3070_s5 }
  0xd0   : > { %1421 = vrot.lane.b32.xlu1 %v3235_v48, %s3071_s6  ;;  %955 = vrot.lane.b32.xlu2 %v2886_v58, %s3070_s5 }
  0xd3   : > { %1113 = vrot.lane.b32.xlu0 %v3235_v48, %s3072_s7 }
  0xd4   : > { %690 = vmatmul.bf16.gmra.mxu1 %v2874_v21 }
  0xd8   : > { %1267 = vrot.lane.b32.xlu1 %v3235_v48, %s3073_s8  ;;  %1419 = vrot.lane.b32.xlu2 %v3245_v52, %s3071_s6  ;;  %v2891_v48 = vld [vmem:[#allocation4 + $0x50] sm:$0xff] }
  0xdb   : > { %953 = vrot.lane.b32.xlu0 %v2885_v62, %s3070_s5 }
  0xe0   : > { %1111 = vrot.lane.b32.xlu1 %v3245_v52, %s3072_s7  ;;  %1265 = vrot.lane.b32.xlu2 %v3245_v52, %s3073_s8  ;;  %v2878_v52 = vld [vmem:[#allocation4 + $0x28] sm:$0xff] }
  0xe3   : > { %1417 = vrot.lane.b32.xlu0 %v2886_v58, %s3071_s6 }
  0xe4   : > { %695 = vmatmul.bf16.gmra.mxu1 %v2875_v27  ;;  %v3324_v27 = vld [vmem:[%s4185_s3] sm:$0xff] }
  0xe8   : > { %951 = vrot.lane.b32.xlu1 %v2884_v2, %s3070_s5  ;;  %1109 = vrot.lane.b32.xlu2 %v2886_v58, %s3072_s7 }
  0xeb   : > { %1263 = vrot.lane.b32.xlu0 %v2886_v58, %s3073_s8 }
  0xf0   : > { %1415 = vrot.lane.b32.xlu1 %v2885_v62, %s3071_s6  ;;  %949 = vrot.lane.b32.xlu2 %v2883_v4, %s3070_s5 }
  0xf3   : > { %1107 = vrot.lane.b32.xlu0 %v2885_v62, %s3072_s7 }
  0xf4   : > { %700 = vmatmul.bf16.gmra.mxu1 %v2876_v35 }
  0xf8   : > { %1261 = vrot.lane.b32.xlu1 %v2885_v62, %s3073_s8  ;;  %1413 = vrot.lane.b32.xlu2 %v2884_v2, %s3071_s6 }
  0xfa   : > { %v563_v9 = vpop.permute.xlu2 %562 }
  0xfb   : > { %947 = vrot.lane.b32.xlu0 %v2882_v6, %s3070_s5  ;;  %572 = vmatpush.bf16.msra.mxu0 %v563_v9 }
 0x100   : > { %1105 = vrot.lane.b32.xlu1 %v2884_v2, %s3072_s7  ;;  %1259 = vrot.lane.b32.xlu2 %v2884_v2, %s3073_s8 }
 0x102   : > { %v802_v10 = vpop.permute.xlu2 %801 }
 0x103   : > { %1411 = vrot.lane.b32.xlu0 %v2883_v4, %s3071_s6 }
 0x104   : > { %705 = vmatmul.bf16.gmra.mxu1 %v2877_v44 }
 0x108   : > { %945 = vrot.lane.b32.xlu1 %v2881_v8, %s3070_s5  ;;  %1103 = vrot.lane.b32.xlu2 %v2883_v4, %s3072_s7 }
 0x10a   : > { %v557_v11 = vpop.permute.xlu2 %556 }
 0x10b   : > { %1257 = vrot.lane.b32.xlu0 %v2883_v4, %s3073_s8  ;;  %v2880_v4 = vld [vmem:[#allocation4 + $0x38] sm:$0xff] }
 0x110   : > { %1409 = vrot.lane.b32.xlu1 %v2882_v6, %s3071_s6  ;;  %1101 = vrot.lane.b32.xlu2 %v2882_v6, %s3072_s7 }
 0x112   : > { %v806_v12 = vpop.permute.xlu1 %805  ;;  %v796_v13 = vpop.permute.xlu2 %795 }
 0x113   : > { %815 = vmatpush.bf16.msra.mxu2 %v806_v12  ;;  %1255 = vrot.lane.b32.xlu0 %v2882_v6, %s3073_s8  ;;  %v2894_v6 = vld [vmem:[#allocation4 + $0x68] sm:$0xff] }
 0x114   : > { %710 = vmatmul.bf16.gmra.mxu1 %v2878_v52 }
 0x115   : > { %v804_v14 = vpop.permute.xlu0 %803 }
 0x117   : > { %816 = vmatpush.bf16.msra.mxu2 %v804_v14 }
 0x118   : > { %1407 = vrot.lane.b32.xlu1 %v2881_v8, %s3071_s6  ;;  %1099 = vrot.lane.b32.xlu2 %v2881_v8, %s3072_s7 }
 0x11a   : > { %v561_v16 = vpop.permute.xlu1 %560  ;;  %v551_v17 = vpop.permute.xlu2 %550 }
 0x11b   : > { %573 = vmatpush.bf16.msra.mxu0 %v561_v16  ;;  %817 = vmatpush.bf16.msra.mxu2 %v802_v10 }
 0x11c   : > { %1253 = vrot.lane.b32.xlu0 %v2881_v8, %s3073_s8  ;;  %v2906_v8 = vld [vmem:[#allocation4 + $0xc8] sm:$0xff] }
 0x11d   : > { %v559_v18 = vpop.permute.xlu0 %558 }
 0x11f   : > { %574 = vmatpush.bf16.msra.mxu0 %v559_v18  ;;  %v2895_v18 = vld [vmem:[#allocation4 + $0x70] sm:$0xff] }
 0x122   : > { %v800_v19 = vpop.permute.xlu1 %799  ;;  %v960_v20 = vpop.permute.xlu2 %959 }
 0x123   : > { %818 = vmatpush.bf16.msra.mxu2 %v800_v19  ;;  %575 = vmatpush.bf16.msra.mxu0 %v557_v11  ;;  %v2907_v19 = vld [vmem:[#allocation4 + $0xd0] sm:$0xff] }
 0x124   : > { %969 = vmatpush.bf16.msra.mxu3 %v960_v20  ;;  %715 = vmatmul.bf16.gmra.mxu1 %v2879_v60 }
 0x125   : > { %v798_v22 = vpop.permute.xlu0 %797 }
 0x127   : > { %819 = vmatpush.bf16.msra.mxu2 %v798_v22  ;;  %v2904_v22 = vld [vmem:[#allocation4 + $0xb8] sm:$0xff] }
 0x12a   : > { %v555_v23 = vpop.permute.xlu1 %554  ;;  %v956_v26 = vpop.permute.xlu2 %955 }
 0x12b   : > { %576 = vmatpush.bf16.msra.mxu0 %v555_v23  ;;  %820 = vmatpush.bf16.msra.mxu2 %v796_v13  ;;  %v2921_v13 = vld [vmem:[#allocation4 + $0x140] sm:$0xff]  ;;  %v2922_v23 = vld [vmem:[#allocation4 + $0x148] sm:$0xff] }
 0x12d   : > { %v553_v24 = vpop.permute.xlu0 %552 }
 0x12f   : > { %577 = vmatpush.bf16.msra.mxu0 %v553_v24  ;;  %v2896_v24 = vld [vmem:[#allocation4 + $0x78] sm:$0xff] }
 0x132   : > { %v794_v25 = vpop.permute.xlu1 %793  ;;  %v1420_v33 = vpop.permute.xlu2 %1419 }
 0x133   : > { %821 = vmatpush.bf16.msra.mxu2 %v794_v25  ;;  %578 = vmatpush.bf16.msra.mxu0 %v551_v17  ;;  %v2908_v25 = vld [vmem:[#allocation4 + $0xd8] sm:$0xff] }
 0x134   : > { %720 = vmatmul.bf16.gmra.mxu1 %v2880_v4 }
 0x135   : > { %v792_v28 = vpop.permute.xlu0 %791 }
 0x137   : > { %822 = vmatpush.bf16.msra.mxu2 %v792_v28  ;;  %v3074_v28 = vmov 0  }
 0x138   : > { %2981 = vset.pattern.permute.xlu1 %v3074_v28  ;;  %2983 = vset.pattern.permute.xlu0 %v3074_v28 }
 0x139   : > { %1498 = vperm.xlu1 %2981, %v3324_v27   ;;  %2982 = vset.pattern.permute.xlu2 %v3074_v28 }
 0x13a   : > { %v549_v30 = vpop.permute.xlu1 %548  ;;  %823 = vmatmul.bf16.vlgmr.msra.gmra.mxu2 %v2897_v29  ;;  %v1266_v38 = vpop.permute.xlu2 %1265 }
 0x13b   : > { %579 = vmatpush.bf16.msra.mxu0 %v549_v30  ;;  %v2929_v30 = vld [vmem:[#allocation4 + $0x180] sm:$0xff] }
 0x13d   : > { %v958_v32 = vpop.permute.xlu0 %957 }
 0x13e   : > { %580 = vmatmul.bf16.vlgmr.msra.gmra.mxu0 %v2889_v31  ;;  %970 = vmatpush.bf16.msra.mxu3 %v958_v32  ;;  %v2923_v31 = vld [vmem:[#allocation4 + $0x150] sm:$0xff]  ;;  %v2909_v32 = vld [vmem:[#allocation4 + $0xe0] sm:$0xff] }
 0x141   : > { %v686_v14 = vpop.f32.mrf.mxu1 }
 0x142   : > { %v1422_v34 = vpop.permute.xlu1 %1421  ;;  %971 = vmatpush.bf16.msra.mxu3 %v956_v26  ;;  %v1110_v43 = vpop.permute.xlu2 %1109 }
 0x143   : > { %1431 = vmatpush.bf16.msrb.mxu2 %v1422_v34 }
 0x145   : > { %v1114_v36 = vpop.permute.xlu0 %1113 }
 0x146   : > { %1123 = vmatpush.bf16.msrb.mxu0 %v1114_v36 }
 0x147   : > { %1432 = vmatpush.bf16.msrb.mxu2 %v1420_v33  ;;  %v2913_v33 = vld [vmem:[#allocation4 + $0x100] sm:$0xff] }
 0x149   : > { %v688_v20 = vpop.f32.mrf.mxu1 }
 0x14a   : > { %v1268_v39 = vpop.permute.xlu1 %1267  ;;  %828 = vmatmul.bf16.gmra.mxu2 %v2898_v37  ;;  %v950_v49 = vpop.permute.xlu2 %949 }
 0x14b   : > { %1277 = vmatpush.bf16.msrb.mxu1 %v1268_v39  ;;  %v3332_v39 = vld [vmem:[%s4185_s3 + $0x10] sm:$0xff] }
 0x14c   : > { %1508 = vperm.xlu0 %2983, %v3332_v39  }
 0x14d   : > { %v954_v41 = vpop.permute.xlu0 %953 }
 0x14e   : > { %585 = vmatmul.bf16.gmra.mxu0 %v2890_v40  ;;  %972 = vmatpush.bf16.msra.mxu3 %v954_v41 }
 0x14f   : > { %1278 = vmatpush.bf16.msrb.mxu1 %v1266_v38 }
 0x151   : > { %v691_v21 = vpop.f32.mrf.mxu1 }
 0x152   : > { %v1112_v42 = vpop.permute.xlu1 %1111  ;;  %v1414_v58 = vpop.permute.xlu2 %1413 }
 0x153   : > { %1124 = vmatpush.bf16.msrb.mxu0 %v1112_v42 }
 0x155   : > { %v1418_v45 = vpop.permute.xlu0 %1417 }
 0x156   : > { %1433 = vmatpush.bf16.msrb.mxu2 %v1418_v45  ;;  %v2930_v45 = vld [vmem:[#allocation4 + $0x188] sm:$0xff] }
 0x157   : > { %1125 = vmatpush.bf16.msrb.mxu0 %v1110_v43 }
 0x159   : > { %v693_v26 = vpop.f32.mrf.mxu1 }
 0x15a   : > { %v952_v47 = vpop.permute.xlu1 %951  ;;  %833 = vmatmul.bf16.gmra.mxu2 %v2899_v46  ;;  %v1260_v2 = vpop.permute.xlu2 %1259  ;;  %v3340_v46 = vld [vmem:[%s4185_s3 + $0x18] sm:$0xff] }
 0x15b   : > { %973 = vmatpush.bf16.msra.mxu3 %v952_v47  ;;  %v2924_v47 = vld [vmem:[#allocation4 + $0x158] sm:$0xff]  ;;  %1513 = vperm.xlu1 %2981, %v3340_v46  }
 0x15d   : > { %v1264_v50 = vpop.permute.xlu0 %1263 }
 0x15e   : > { %590 = vmatmul.bf16.gmra.mxu0 %v2891_v48  ;;  %1279 = vmatpush.bf16.msrb.mxu1 %v1264_v50  ;;  %v2910_v48 = vld [vmem:[#allocation4 + $0xe8] sm:$0xff] }
 0x15f   : > { %974 = vmatpush.bf16.msra.mxu3 %v950_v49  ;;  %v2914_v49 = vld [vmem:[#allocation4 + $0x108] sm:$0xff] }
 0x161   : > { %v696_v29 = vpop.f32.mrf.mxu1 }
 0x162   : > { %v1416_v51 = vpop.permute.xlu1 %1415  ;;  %v1104_v7 = vpop.permute.xlu2 %1103 }
 0x163   : > { %1434 = vmatpush.bf16.msrb.mxu2 %v1416_v51 }
 0x165   : > { %v1108_v53 = vpop.permute.xlu0 %1107 }
 0x166   : > { %1126 = vmatpush.bf16.msrb.mxu0 %v1108_v53 }
 0x167   : > { %1435 = vmatpush.bf16.msrb.mxu2 %v1414_v58 }
 0x169   : > { %v698_v37 = vpop.f32.mrf.mxu1 }
 0x16a   : > { %v1262_v55 = vpop.permute.xlu1 %1261  ;;  %838 = vmatmul.bf16.gmra.mxu2 %v2900_v54  ;;  %v1102_v11 = vpop.permute.xlu2 %1101 }
 0x16b   : > { %1280 = vmatpush.bf16.msrb.mxu1 %v1262_v55  ;;  %v3348_v55 = vld [vmem:[%s4185_s3 + $0x8] sm:$0xff] }
 0x16c   : > { %1503 = vperm.xlu2 %2982, %v3348_v55  }
 0x16d   : > { %v948_v57 = vpop.permute.xlu0 %947 }
 0x16e   : > { %595 = vmatmul.bf16.gmra.mxu0 %v2892_v56  ;;  %975 = vmatpush.bf16.msra.mxu3 %v948_v57 }
 0x16f   : > { %1281 = vmatpush.bf16.msrb.mxu1 %v1260_v2 }
 0x171   : > { %v701_v43 = vpop.f32.mrf.mxu1 }
 0x172   : > { %v1106_v59 = vpop.permute.xlu1 %1105  ;;  %v1100_v17 = vpop.permute.xlu2 %1099 }
 0x173   : > { %1127 = vmatpush.bf16.msrb.mxu0 %v1106_v59 }
 0x175   : > { %v1412_v1 = vpop.permute.xlu0 %1411 }
 0x176   : > { %1436 = vmatpush.bf16.msrb.mxu2 %v1412_v1  ;;  %v2915_v1 = vld [vmem:[#allocation4 + $0x110] sm:$0xff] }
 0x177   : > { %1128 = vmatpush.bf16.msrb.mxu0 %v1104_v7 }
 0x179   : > { %v703_v53 = vpop.f32.mrf.mxu1 }
 0x17a   : > { %v946_v62 = vpop.permute.xlu1 %945  ;;  %843 = vmatmul.bf16.gmra.mxu2 %v2901_v61  ;;  %v2931_v61 = vld [vmem:[#allocation4 + $0x190] sm:$0xff] }
 0x17b   : > { %976 = vmatpush.bf16.msra.mxu3 %v946_v62  ;;  %1129 = vmatpush.bf16.msrb.mxu0 %v1102_v11  ;;  %v3356_v62 = vld [vmem:[%s4185_s3 + $0x28] sm:$0xff] }
 0x17c   : > { %1523 = vperm.xlu1 %2981, %v3356_v62  }
 0x17d   : > { %v1258_v3 = vpop.permute.xlu0 %1257 }
 0x17e   : > { %600 = vmatmul.bf16.gmra.mxu0 %v2893_v63  ;;  %977 = vmatmul.bf16.vlgmr.msra.gmra.mxu3 %v2905_v0  ;;  %v2925_v63 = vld [vmem:[#allocation4 + $0x160] sm:$0xff]  ;;  %v2911_v0 = vld [vmem:[#allocation4 + $0xf0] sm:$0xff] }
 0x17f   : > { %1282 = vmatpush.bf16.msrb.mxu1 %v1258_v3  ;;  %1130 = vmatpush.bf16.msrb.mxu0 %v1100_v17  ;;  %v2916_v17 = vld [vmem:[#allocation4 + $0x118] sm:$0xff] }
 0x181   : > { %v706_v59 = vpop.f32.mrf.mxu1 }
 0x182   : > { %v1410_v10 = vpop.permute.xlu1 %1409 }
 0x183   : > { %1437 = vmatpush.bf16.msrb.mxu2 %v1410_v10  ;;  %v2932_v10 = vld [vmem:[#allocation4 + $0x198] sm:$0xff] }
 0x185   : > { %v1256_v9 = vpop.permute.xlu0 %1255 }
 0x186   : > { %1283 = vmatpush.bf16.msrb.mxu1 %v1256_v9 }
 0x18a   : > { %848 = vmatmul.bf16.gmra.mxu2 %v2902_v5  ;;  %v1408_v16 = vpop.permute.xlu1 %1407  ;;  %v708_v5 = vpop.f32.mrf.mxu1 }
 0x18b   : > { %1438 = vmatpush.bf16.msrb.mxu2 %v1408_v16  ;;  %v2912_v16 = vld [vmem:[#allocation4 + $0xf8] sm:$0xff] }
 0x18e   : > { %605 = vmatmul.bf16.gmra.mxu0 %v2894_v6  ;;  %982 = vmatmul.bf16.gmra.mxu3 %v2906_v8  ;;  %v1254_v12 = vpop.permute.xlu0 %1253 }
 0x18f   : > { %1284 = vmatpush.bf16.msrb.mxu1 %v1254_v12 }
 0x192   : > { %1285 = vmatmul.bf16.vlgmr.msrb.gmra.mxu1 %v2921_v13  ;;  %v711_v11 = vpop.f32.mrf.mxu1  ;;  %v3366_v13 = vld [vmem:[%s4185_s3 + $0x20] sm:$0xff] }
 0x193   : > { %1518 = vperm.xlu2 %2982, %v3366_v13  }
 0x19a   : > { %853 = vmatmul.bf16.gmra.mxu2 %v2903_v15  ;;  %v2926_v15 = vld [vmem:[#allocation4 + $0x168] sm:$0xff] }
 0x19e   : > { %610 = vmatmul.bf16.gmra.mxu0 %v2895_v18  ;;  %987 = vmatmul.bf16.gmra.mxu3 %v2907_v19 }
 0x1a2   : > { %1290 = vmatmul.bf16.gmra.mxu1 %v2922_v23 }
 0x1aa   : > { %858 = vmatmul.bf16.gmra.mxu2 %v2904_v22  ;;  %v713_v22 = vpop.f32.mrf.mxu1 }
 0x1ae   : > { %615 = vmatmul.bf16.gmra.mxu0 %v2896_v24  ;;  %992 = vmatmul.bf16.gmra.mxu3 %v2908_v25 }
 0x1b2   : > { %1295 = vmatmul.bf16.gmra.mxu1 %v2923_v31  ;;  %v3394_v31 = vld [vmem:[%s4185_s3 + $0x30] sm:$0xff] }
 0x1b3   : > { %1528 = vperm.xlu2 %2982, %v3394_v31  }
 0x1ba   : > { %1439 = vmatmul.bf16.vlgmr.msrb.gmra.mxu2 %v2929_v30  ;;  %v2933_v30 = vld [vmem:[#allocation4 + $0x1a0] sm:$0xff] }
 0x1bb   : > { %v581_v34 = vpop.f32.mrf.mxu0 }
 0x1bc   : > { %v687_v35 = vadd.f32 %v686_v14, %v581_v34  ;;  %v3371_v14 = vld [vmem:[%s4185_s3 + $0x38] sm:$0xff]  ;;  %v2917_v34 = vld [vmem:[#allocation4 + $0x120] sm:$0xff] }
 0x1bd   : > { %v824_v36 = vpop.f32.mrf.mxu2  ;;  %1533 = vperm.xlu0 %2983, %v3371_v14  }
 0x1be   : > { %v3327_v38 = vadd.f32 %v824_v36, %v687_v35  ;;  %997 = vmatmul.bf16.gmra.mxu3 %v2909_v32  ;;  %1131 = vmatmul.bf16.vlgmr.msrb.gmra.mxu0 %v2913_v33  ;;  %v2927_v32 = vld [vmem:[#allocation4 + $0x170] sm:$0xff]  ;;  %v716_v33 = vpop.f32.mrf.mxu1 }
 0x1c2   : > { %1300 = vmatmul.bf16.gmra.mxu1 %v2924_v47 }
 0x1c3   : > { %v583_v40 = vpop.f32.mrf.mxu0 }
 0x1c4   : > { %v689_v41 = vadd.f32 %v688_v20, %v583_v40  ;;  %v3378_v20 = vld [vmem:[%s4185_s3 + $0x40] sm:$0xff] }
 0x1c5   : > { %v826_v42 = vpop.f32.mrf.mxu2  ;;  %1538 = vperm.xlu1 %2981, %v3378_v20  }
 0x1c6   : > { %v3335_v44 = vadd.f32 %v826_v42, %v689_v41  ;;  %v3408_v42 = vld [vmem:[%s4185_s3 + $0x50] sm:$0xff] }
 0x1c7   : > { %1548 = vperm.xlu0 %2983, %v3408_v42  }
 0x1ca   : > { %1444 = vmatmul.bf16.gmra.mxu2 %v2930_v45  ;;  %v718_v45 = vpop.f32.mrf.mxu1 }
 0x1cb   : > { %v586_v50 = vpop.f32.mrf.mxu0 }
 0x1cc   : > { %v692_v51 = vadd.f32 %v691_v21, %v586_v50 }
 0x1cd   : > { %v829_v52 = vpop.f32.mrf.mxu2 }
 0x1ce   : > { %v3343_v54 = vadd.f32 %v829_v52, %v692_v51  ;;  %1002 = vmatmul.bf16.gmra.mxu3 %v2910_v48  ;;  %1136 = vmatmul.bf16.gmra.mxu0 %v2914_v49  ;;  %v2934_v52 = vld [vmem:[#allocation4 + $0x1a8] sm:$0xff] }
 0x1d2   : > { %1305 = vmatmul.bf16.gmra.mxu1 %v2925_v63 }
 0x1d3   : > { %v588_v56 = vpop.f32.mrf.mxu0 }
 0x1d4   : > { %v694_v57 = vadd.f32 %v693_v26, %v588_v56  ;;  %v3386_v26 = vld [vmem:[%s4185_s3 + $0x58] sm:$0xff] }
 0x1d5   : > { %v831_v58 = vpop.f32.mrf.mxu2  ;;  %1553 = vperm.xlu1 %2981, %v3386_v26   ;;  %v2928_v56 = vld [vmem:[#allocation4 + $0x178] sm:$0xff] }
 0x1d6   : > { %v3351_v60 = vadd.f32 %v831_v58, %v694_v57  ;;  %v3427_v58 = vld [vmem:[%s4185_s3 + $0x68] sm:$0xff] }
 0x1d7   : > { %1563 = vperm.xlu0 %2983, %v3427_v58  }
 0x1da   : > { %1449 = vmatmul.bf16.gmra.mxu2 %v2931_v61  ;;  %v721_v61 = vpop.f32.mrf.mxu1 }
 0x1db   : > { %v591_v2 = vpop.f32.mrf.mxu0 }
 0x1dc   : > { %v697_v3 = vadd.f32 %v696_v29, %v591_v2  ;;  %v3435_v2 = vld [vmem:[%s4185_s3 + $0x60] sm:$0xff] }
 0x1dd   : > { %v834_v4 = vpop.f32.mrf.mxu2 }
 0x1de   : > { %v3359_v7 = vadd.f32 %v834_v4, %v697_v3  ;;  %1007 = vmatmul.bf16.gmra.mxu3 %v2911_v0  ;;  %1141 = vmatmul.bf16.gmra.mxu0 %v2915_v1 }
 0x1e2   : > { %1310 = vmatmul.bf16.gmra.mxu1 %v2926_v15  ;;  %v3446_v15 = vld [vmem:[%s4185_s3 + $0x78] sm:$0xff] }
 0x1e3   : > { %v593_v6 = vpop.f32.mrf.mxu0 }
 0x1e4   : > { %v699_v8 = vadd.f32 %v698_v37, %v593_v6  ;;  %v3400_v37 = vld [vmem:[%s4185_s3 + $0x70] sm:$0xff] }
 0x1e5   : > { %v836_v9 = vpop.f32.mrf.mxu2  ;;  %1568 = vperm.xlu1 %2981, %v3400_v37  }
 0x1e6   : > { %v3361_v12 = vadd.f32 %v836_v9, %v699_v8  ;;  %v723_v9 = vpop.f32.mrf.mxu1 }
 0x1ea   : > { %1454 = vmatmul.bf16.gmra.mxu2 %v2932_v10 }
 0x1eb   : > { %v596_v18 = vpop.f32.mrf.mxu0 }
 0x1ec   : > { %v702_v19 = vadd.f32 %v701_v43, %v596_v18 }
 0x1ed   : > { %v839_v21 = vpop.f32.mrf.mxu2 }
 0x1ee   : > { %v3381_v23 = vadd.f32 %v839_v21, %v702_v19  ;;  %1012 = vmatmul.bf16.gmra.mxu3 %v2912_v16  ;;  %1146 = vmatmul.bf16.gmra.mxu0 %v2916_v17  ;;  %v2919_v17 = vld [vmem:[#allocation4 + $0x130] sm:$0xff]  ;;  %v3075_v21 = vmov 1  }
 0x1ef   : > { %2985 = vset.pattern.permute.xlu1 %v3075_v21  ;;  %2984 = vset.pattern.permute.xlu0 %v3075_v21 }
 0x1f0   : > { %1740 = vperm.xlu1 %2985, %v3348_v55   ;;  %1736 = vperm.xlu0 %2984, %v3324_v27  }
 0x1f2   : > { %1315 = vmatmul.bf16.gmra.mxu1 %v2927_v32 }
 0x1f3   : > { %v598_v24 = vpop.f32.mrf.mxu0 }
 0x1f4   : > { %v704_v25 = vadd.f32 %v703_v53, %v598_v24  ;;  %v3419_v53 = vld [vmem:[%s4185_s3 + $0x48] sm:$0xff] }
 0x1f5   : > { %v841_v28 = vpop.f32.mrf.mxu2  ;;  %1543 = vperm.xlu2 %2982, %v3419_v53  }
 0x1f6   : > { %v3389_v29 = vadd.f32 %v841_v28, %v704_v25 }
 0x1f8   : > { %1748 = vperm.xlu1 %2985, %v3340_v46   ;;  %1756 = vperm.xlu0 %2984, %v3356_v62  }
 0x1fa   : > { %1459 = vmatmul.bf16.gmra.mxu2 %v2933_v30 }
 0x1fb   : > { %v601_v35 = vpop.f32.mrf.mxu0 }
 0x1fc   : > { %v707_v36 = vadd.f32 %v706_v59, %v601_v35  ;;  %v2936_v35 = vld [vmem:[#allocation4 + $0x1b8] sm:$0xff] }
 0x1fd   : > { %v844_v40 = vpop.f32.mrf.mxu2  ;;  %1558 = vperm.xlu2 %2982, %v3435_v2  }
 0x1fe   : > { %v3403_v41 = vadd.f32 %v844_v40, %v707_v36  ;;  %1151 = vmatmul.bf16.gmra.mxu0 %v2917_v34  ;;  %v2920_v40 = vld [vmem:[#allocation4 + $0x138] sm:$0xff] }
 0x200   : > { %1760 = vperm.xlu1 %2985, %v3394_v31   ;;  %1768 = vperm.xlu0 %2984, %v3378_v20  }
 0x201   : > { %v978_v43 = vpop.f32.mrf.mxu3 }
 0x202   : > { %v3412_v47 = vadd.f32 %v978_v43, %v3327_v38  ;;  %1320 = vmatmul.bf16.gmra.mxu1 %v2928_v56  ;;  %v2918_v38 = vld [vmem:[#allocation4 + $0x128] sm:$0xff] }
 0x203   : > { %v603_v48 = vpop.f32.mrf.mxu0 }
 0x204   : > { %v709_v49 = vadd.f32 %v708_v5, %v603_v48 }
 0x205   : > { %v846_v50 = vpop.f32.mrf.mxu2  ;;  %1573 = vperm.xlu2 %2982, %v3446_v15  }
 0x206   : > { %v3414_v51 = vadd.f32 %v846_v50, %v709_v49 }
 0x208   : > { %1772 = vperm.xlu1 %2985, %v3419_v53   ;;  %1780 = vperm.xlu0 %2984, %v3386_v26  }
 0x209   : > { %v3422_v57 = vpop.f32.mrf.mxu3 }
 0x20a   : > { %1464 = vmatmul.bf16.gmra.mxu2 %v2934_v52 }
 0x20b   : > { %v606_v59 = vpop.f32.mrf.mxu0 }
 0x20c   : > { %v712_v63 = vadd.f32 %v711_v11, %v606_v59  ;;  %v2935_v11 = vld [vmem:[#allocation4 + $0x1b0] sm:$0xff] }
 0x20d   : > { %v849_v0 = vpop.f32.mrf.mxu2  ;;  %2986 = vset.pattern.permute.xlu2 %v3075_v21 }
 0x20e   : > { %v3430_v1 = vadd.f32 %v849_v0, %v712_v63  ;;  %1156 = vmatmul.bf16.gmra.mxu0 %v2918_v38  ;;  %1744 = vperm.xlu2 %2986, %v3332_v39  }
 0x20f   : > { %v1286_v24 = vpop.f32.mrf.mxu1 }
 0x210   : > { %1784 = vperm.xlu1 %2985, %v3435_v2   ;;  %1792 = vperm.xlu0 %2984, %v3400_v37  }
 0x211   : > { %v983_v3 = vpop.f32.mrf.mxu3 }
 0x212   : > { %v3439_v4 = vadd.f32 %v983_v3, %v3343_v54 }
 0x213   : > { %v608_v5 = vpop.f32.mrf.mxu0 }
 0x214   : > { %v714_v6 = vadd.f32 %v713_v22, %v608_v5 }
 0x215   : > { %v851_v8 = vpop.f32.mrf.mxu2 }
 0x216   : > { %v3441_v10 = vadd.f32 %v851_v8, %v714_v6  ;;  %1752 = vperm.xlu2 %2986, %v3366_v13   ;;  %v1019_v6 = vadd.f32 %v3422_v57, %v3335_v44 }
 0x217   : > { %v1288_v36 = vpop.f32.mrf.mxu1 }
 0x218   : > { %1796 = vperm.xlu1 %2985, %v3446_v15  }
 0x219   : > { %v3449_v16 = vpop.f32.mrf.mxu3 }
 0x21a   : > { %1469 = vmatmul.bf16.gmra.mxu2 %v2935_v11  ;;  %v1499_v11 = vpop.permute.xlu1 %1498 }
 0x21b   : > { %v611_v54 = vpop.f32.mrf.mxu0 }
 0x21c   : > { %v717_v18 = vadd.f32 %v716_v33, %v611_v54 }
 0x21d   : > { %v854_v19 = vpop.f32.mrf.mxu2 }
 0x21e   : > { %v3451_v22 = vadd.f32 %v854_v19, %v717_v18  ;;  %1161 = vmatmul.bf16.gmra.mxu0 %v2919_v17  ;;  %1764 = vperm.xlu2 %2986, %v3371_v14  }
 0x21f   : > { %v1291_v50 = vpop.f32.mrf.mxu1 }
 0x221   : > { %v988_v25 = vpop.f32.mrf.mxu3 }
 0x222   : > { %v3457_v28 = vadd.f32 %v988_v25, %v3359_v7 }
 0x223   : > { %v613_v30 = vpop.f32.mrf.mxu0 }
 0x224   : > { %v719_v32 = vadd.f32 %v718_v45, %v613_v30 }
 0x225   : > { %v856_v33 = vpop.f32.mrf.mxu2 }
 0x226   : > { %v3459_v34 = vadd.f32 %v856_v33, %v719_v32  ;;  %1776 = vperm.xlu2 %2986, %v3408_v42  }
 0x227   : > { %v1293_v0 = vpop.f32.mrf.mxu1 }
 0x229   : > { %v990_v25 = vpop.f32.mrf.mxu3 }
 0x22a   : > { %1474 = vmatmul.bf16.gmra.mxu2 %v2936_v35 }
 0x22b   : > { %v616_v43 = vpop.f32.mrf.mxu0 }
 0x22c   : > { %v722_v48 = vadd.f32 %v721_v61, %v616_v43 }
 0x22d   : > { %v859_v49 = vpop.f32.mrf.mxu2 }
 0x22e   : > { %v3464_v7 = vadd.f32 %v859_v49, %v722_v48  ;;  %1166 = vmatmul.bf16.gmra.mxu0 %v2920_v40  ;;  %1788 = vperm.xlu2 %2986, %v3427_v58   ;;  %v1509_v40 = vpop.permute.xlu0 %1508  ;;  %v1021_v49 = vadd.f32 %v3449_v16, %v3351_v60 }
 0x22f   : > { %v1296_v18 = vpop.f32.mrf.mxu1 }
 0x233   : > { %v618_v45 = vpop.f32.mrf.mxu0 }
 0x234   : > { %v724_v52 = vadd.f32 %v723_v9, %v618_v45 }
 0x235   : > { %v861_v56 = vpop.f32.mrf.mxu2 }
 0x236   : > { %v3469_v38 = vadd.f32 %v861_v56, %v724_v52 }
 0x237   : > { %v1298_v48 = vpop.f32.mrf.mxu1 }
 0x23b   : > { %v1132_v59 = vpop.f32.mrf.mxu0 }
 0x23c   : > { %v1172_v61 = vadd.f32 %v1132_v59, %v3412_v47  ;;  %v1504_v47 = vpop.permute.xlu2 %1503 }
 0x23d   : > { %v1440_v63 = vpop.f32.mrf.mxu2 }
 0x23e   : > { %v1326_v3 = vadd.f32 %v1286_v24, %v1172_v61  ;;  %v993_v61 = vpop.f32.mrf.mxu3 }
 0x240   : > { %v1480_v5 = vadd.f32 %v1440_v63, %v1326_v3 }
 0x242   : > { %v3481_v19 = vadd.f32 %v1499_v11, %v1480_v5  ;;  %v3076_v5 = vmov 2  }
 0x243   : > { %v1134_v8 = vpop.f32.mrf.mxu0  ;;  %2989 = vset.pattern.permute.xlu1 %v3076_v5  ;;  %2988 = vset.pattern.permute.xlu0 %v3076_v5 }
 0x244   : > { %v1173_v9 = vadd.f32 %v1134_v8, %v1019_v6  ;;  %v1593_v44 = vsel %vm1592_vm4, %v3481_v19, 0.0  ;;  %1872 = vperm.xlu1 %2989, %v3400_v37   ;;  %1820 = vperm.xlu0 %2988, %v3348_v55   ;;  %v1301_v8 = vpop.f32.mrf.mxu1  ;;  %v1519_v37 = vpop.permute.xlu2 %1518 }
 0x245   : > { %v1442_v17 = vpop.f32.mrf.mxu2  ;;  %2987 = vset.pattern.permute.xlu2 %v3076_v5 }
 0x246   : > { %v1327_v54 = vadd.f32 %v1288_v36, %v1173_v9  ;;  %1816 = vperm.xlu2 %2987, %v3324_v27   ;;  %v1023_v27 = vadd.f32 %v990_v25, %v3361_v12  ;;  %v1024_v12 = vadd.f32 %v993_v61, %v3381_v23 }
 0x248   : > { %v1481_v21 = vadd.f32 %v1442_v17, %v1327_v54 }
 0x24a   : > { %v3483_v24 = vadd.f32 %v1504_v47, %v1481_v21  ;;  %v995_v47 = vpop.f32.mrf.mxu3 }
 0x24b   : > { %v1137_v30 = vpop.f32.mrf.mxu0  ;;  %v1025_v23 = vadd.f32 %v995_v47, %v3389_v29 }
 0x24c   : > { %v1594_v57 = vsel %vm1592_vm4, %v3483_v24, 0.0  ;;  %v1174_v32 = vadd.f32 %v1137_v30, %v3439_v4  ;;  %1864 = vperm.xlu1 %2989, %v3435_v2   ;;  %1856 = vperm.xlu0 %2988, %v3408_v42  }
 0x24d   : > { %v1595_v33 = vadd.f32 %v1594_v57, %v1593_v44  ;;  %v1445_v35 = vpop.f32.mrf.mxu2 }
 0x24e   : > { %v1328_v36 = vadd.f32 %v1291_v50, %v1174_v32  ;;  %v1514_v50 = vpop.permute.xlu1 %1513  ;;  %1876 = vperm.xlu2 %2987, %v3446_v15  }
 0x250   : > { %v1482_v43 = vadd.f32 %v1445_v35, %v1328_v36 }
 0x252   : > { %v3492_v45 = vadd.f32 %v1509_v40, %v1482_v43  ;;  %v998_v43 = vpop.f32.mrf.mxu3 }
 0x253   : > { %v1139_v52 = vpop.f32.mrf.mxu0  ;;  %v1026_v29 = vadd.f32 %v998_v43, %v3403_v41 }
 0x254   : > { %v1596_v56 = vsel %vm1592_vm4, %v3492_v45, 0.0  ;;  %v1175_v59 = vadd.f32 %v1139_v52, %v1021_v49  ;;  %1860 = vperm.xlu1 %2989, %v3386_v26   ;;  %1852 = vperm.xlu0 %2988, %v3419_v53  }
 0x255   : > { %v1597_v63 = vadd.f32 %v1596_v56, %v1595_v33  ;;  %v1447_v3 = vpop.f32.mrf.mxu2  ;;  %v1303_v33 = vpop.f32.mrf.mxu1 }
 0x256   : > { %v1329_v4 = vadd.f32 %v1293_v0, %v1175_v59  ;;  %v1524_v36 = vpop.permute.xlu1 %1523  ;;  %1868 = vperm.xlu2 %2987, %v3427_v58  }
 0x258   : > { %v1483_v60 = vadd.f32 %v1447_v3, %v1329_v4  ;;  %v1529_v3 = vpop.permute.xlu2 %1528 }
 0x25a   : > { %v3499_v16 = vadd.f32 %v1514_v50, %v1483_v60  ;;  %v1000_v5 = vpop.f32.mrf.mxu3 }
 0x25b   : > { %v1142_v6 = vpop.f32.mrf.mxu0 }
 0x25c   : > { %v1598_v9 = vsel %vm1592_vm4, %v3499_v16, 0.0  ;;  %v1176_v0 = vadd.f32 %v1142_v6, %v3457_v28  ;;  %1840 = vperm.xlu1 %2989, %v3394_v31   ;;  %1832 = vperm.xlu0 %2988, %v3366_v13  }
 0x25d   : > { %v1599_v11 = vadd.f32 %v1598_v9, %v1597_v63  ;;  %v1450_v17 = vpop.f32.mrf.mxu2  ;;  %v1306_v26 = vpop.f32.mrf.mxu1 }
 0x25e   : > { %v1330_v54 = vadd.f32 %v1296_v18, %v1176_v0  ;;  %1848 = vperm.xlu2 %2987, %v3378_v20  }
 0x260   : > { %v1484_v21 = vadd.f32 %v1450_v17, %v1330_v54 }
 0x262   : > { %v3508_v30 = vadd.f32 %v1519_v37, %v1484_v21 }
 0x263   : > { %v1144_v44 = vpop.f32.mrf.mxu0 }
 0x264   : > { %v1600_v28 = vsel %vm1592_vm4, %v3508_v30, 0.0  ;;  %v1177_v57 = vadd.f32 %v1144_v44, %v1023_v27  ;;  %1836 = vperm.xlu1 %2989, %v3356_v62   ;;  %1828 = vperm.xlu0 %2988, %v3340_v46   ;;  %v1003_v44 = vpop.f32.mrf.mxu3 }
 0x265   : > { %v1601_v32 = vadd.f32 %v1600_v28, %v1599_v11  ;;  %v1452_v18 = vpop.f32.mrf.mxu2  ;;  %v1534_v11 = vpop.permute.xlu0 %1533 }
 0x266   : > { %v1331_v35 = vadd.f32 %v1298_v48, %v1177_v57  ;;  %v1308_v54 = vpop.f32.mrf.mxu1  ;;  %1844 = vperm.xlu2 %2987, %v3371_v14  }
 0x268   : > { %v1485_v40 = vadd.f32 %v1452_v18, %v1331_v35  ;;  %v1539_v18 = vpop.permute.xlu1 %1538 }
 0x26a   : > { %v3516_v25 = vadd.f32 %v1524_v36, %v1485_v40 }
 0x26b   : > { %v1147_v49 = vpop.f32.mrf.mxu0 }
 0x26c   : > { %v1602_v52 = vsel %vm1592_vm4, %v3516_v25, 0.0  ;;  %v1178_v56 = vadd.f32 %v1147_v49, %v1024_v12 }
 0x26d   : > { %v1603_v59 = vadd.f32 %v1602_v52, %v1601_v32  ;;  %v1455_v48 = vpop.f32.mrf.mxu2 }
 0x26e   : > { %v1332_v63 = vadd.f32 %v1301_v8, %v1178_v56  ;;  %1824 = vperm.xlu2 %2987, %v3332_v39   ;;  %v1311_v36 = vpop.f32.mrf.mxu1  ;;  %v1005_v56 = vpop.f32.mrf.mxu3 }
 0x270   : > { %v1486_v4 = vadd.f32 %v1455_v48, %v1332_v63  ;;  %v1544_v48 = vpop.permute.xlu2 %1543  ;;  %v1028_v63 = vadd.f32 %v1003_v44, %v3430_v1 }
 0x272   : > { %v3524_v61 = vadd.f32 %v1529_v3, %v1486_v4 }
 0x273   : > { %v1149_v50 = vpop.f32.mrf.mxu0 }
 0x274   : > { %v1604_v60 = vsel %vm1592_vm4, %v3524_v61, 0.0  ;;  %v1179_v6 = vadd.f32 %v1149_v50, %v1025_v23 }
 0x275   : > { %v1605_v8 = vadd.f32 %v1604_v60, %v1603_v59  ;;  %v1457_v9 = vpop.f32.mrf.mxu2 }
 0x276   : > { %v1333_v0 = vadd.f32 %v1303_v33, %v1179_v6  ;;  %v1027_v33 = vadd.f32 %v1000_v5, %v3414_v51  ;;  %v1313_v23 = vpop.f32.mrf.mxu1  ;;  %v1549_v6 = vpop.permute.xlu0 %1548 }
 0x278   : > { %v1487_v17 = vadd.f32 %v1457_v9, %v1333_v0  ;;  %v1008_v9 = vpop.f32.mrf.mxu3  ;;  %v1029_v0 = vadd.f32 %v1005_v56, %v3441_v10 }
 0x27a   : > { %v3532_v47 = vadd.f32 %v1534_v11, %v1487_v17 }
 0x27b   : > { %v1152_v37 = vpop.f32.mrf.mxu0 }
 0x27c   : > { %v1606_v21 = vsel %vm1592_vm4, %v3532_v47, 0.0  ;;  %v1180_v27 = vadd.f32 %v1152_v37, %v1026_v29 }
 0x27d   : > { %v1607_v28 = vadd.f32 %v1606_v21, %v1605_v8  ;;  %v1460_v57 = vpop.f32.mrf.mxu2 }
 0x27e   : > { %v1334_v32 = vadd.f32 %v1306_v26, %v1180_v27  ;;  %v1316_v27 = vpop.f32.mrf.mxu1 }
 0x280   : > { %v1488_v62 = vadd.f32 %v1460_v57, %v1334_v32  ;;  %v1030_v57 = vadd.f32 %v1008_v9, %v3451_v22 }
 0x282   : > { %v3538_v35 = vadd.f32 %v1539_v18, %v1488_v62  ;;  %v1010_v62 = vpop.f32.mrf.mxu3 }
 0x283   : > { %v1154_v41 = vpop.f32.mrf.mxu0 }
 0x284   : > { %v1608_v40 = vsel %vm1592_vm4, %v3538_v35, 0.0  ;;  %v1181_v43 = vadd.f32 %v1154_v41, %v1027_v33 }
 0x285   : > { %v1609_v12 = vadd.f32 %v1608_v40, %v1607_v28  ;;  %v1462_v49 = vpop.f32.mrf.mxu2  ;;  %v1554_v28 = vpop.permute.xlu1 %1553 }
 0x286   : > { %v1335_v52 = vadd.f32 %v1308_v54, %v1181_v43 }
 0x288   : > { %v1489_v59 = vadd.f32 %v1462_v49, %v1335_v52  ;;  %v1318_v49 = vpop.f32.mrf.mxu1  ;;  %v1031_v52 = vadd.f32 %v1010_v62, %v3459_v34 }
 0x28a   : > { %v3543_v3 = vadd.f32 %v1544_v48, %v1489_v59 }
 0x28b   : > { %v1157_v26 = vpop.f32.mrf.mxu0 }
 0x28c   : > { %v1610_v51 = vsel %vm1592_vm4, %v3543_v3, 0.0  ;;  %v1182_v4 = vadd.f32 %v1157_v26, %v1028_v63  ;;  %v1013_v63 = vpop.f32.mrf.mxu3 }
 0x28d   : > { %v1465_v5 = vpop.f32.mrf.mxu2  ;;  %v1611_v50 = vadd.f32 %v1610_v51, %v1609_v12  ;;  %v1559_v12 = vpop.permute.xlu2 %1558 }
 0x28e   : > { %v1336_v60 = vadd.f32 %v1311_v36, %v1182_v4 }
 0x290   : > { %v1490_v8 = vadd.f32 %v1465_v5, %v1336_v60  ;;  %v1564_v5 = vpop.permute.xlu0 %1563 }
 0x292   : > { %v3548_v11 = vadd.f32 %v1549_v6, %v1490_v8  ;;  %v1321_v6 = vpop.f32.mrf.mxu1 }
 0x293   : > { %v1159_v17 = vpop.f32.mrf.mxu0 }
 0x294   : > { %v1612_v1 = vsel %vm1592_vm4, %v3548_v11, 0.0  ;;  %v1183_v54 = vadd.f32 %v1159_v17, %v1029_v0 }
 0x295   : > { %v1613_v29 = vadd.f32 %v1612_v1, %v1611_v50  ;;  %v1467_v37 = vpop.f32.mrf.mxu2  ;;  %v1032_v50 = vadd.f32 %v1013_v63, %v3464_v7 }
 0x296   : > { %v1337_v21 = vadd.f32 %v1313_v23, %v1183_v54  ;;  %v1015_v54 = vpop.f32.mrf.mxu3 }
 0x298   : > { %v1491_v44 = vadd.f32 %v1467_v37, %v1337_v21  ;;  %v1569_v21 = vpop.permute.xlu1 %1568 }
 0x29a   : > { %v3553_v32 = vadd.f32 %v1554_v28, %v1491_v44 }
 0x29b   : > { %v1162_v18 = vpop.f32.mrf.mxu0 }
 0x29c   : > { %v1614_v10 = vsel %vm1592_vm4, %v3553_v32, 0.0  ;;  %v1184_v33 = vadd.f32 %v1162_v18, %v1030_v57  ;;  %v1323_v18 = vpop.f32.mrf.mxu1 }
 0x29d   : > { %v1615_v41 = vadd.f32 %v1614_v10, %v1613_v29  ;;  %v1470_v36 = vpop.f32.mrf.mxu2  ;;  %v3077_v29 = vmov 128.0  }
 0x29e   : > { %v1338_v40 = vadd.f32 %v1316_v27, %v1184_v33  ;;  %2999 = vrcp.f32 %v3077_v29  ;;  %v1033_v27 = vadd.f32 %v1015_v54, %v3469_v38 }
 0x2a0   : > { %v1492_v43 = vadd.f32 %v1470_v36, %v1338_v40 }
 0x2a2   : > { %v3558_v56 = vadd.f32 %v1559_v12, %v1492_v43  ;;  %v1574_v43 = vpop.permute.xlu2 %1573 }
 0x2a3   : > { %v1164_v59 = vpop.f32.mrf.mxu0 }
 0x2a4   : > { %v1616_v22 = vsel %vm1592_vm4, %v3558_v56, 0.0  ;;  %v1185_v48 = vadd.f32 %v1164_v59, %v1031_v52  ;;  %v3000_v62 = vpop.eup %2999 }
 0x2a5   : > { %v1617_v26 = vadd.f32 %v1616_v22, %v1615_v41  ;;  %v1472_v51 = vpop.f32.mrf.mxu2  ;;  %v1631_v40 = vmul.f32 128.0, %v3000_v62  ;;  %vm1635_vm5 = vweird.f32 %v3000_v62 }
 0x2a6   : > { %v1339_v4 = vadd.f32 %v1318_v49, %v1185_v48  ;;  %v3567_v48 = vpop.permute.xlu1 %1740 }
 0x2a7   : > { %v1632_v52 = vsub.f32 1.0, %v1631_v40 }
 0x2a8   : > { %v1493_v23 = vadd.f32 %v1472_v51, %v1339_v4 }
 0x2a9   : > { %v1633_v38 = vmul.f32 %v3000_v62, %v1632_v52 }
 0x2aa   : > { %v1589_v60 = vadd.f32 %v1564_v5, %v1493_v23 }
 0x2ab   : > { %v1167_v8 = vpop.f32.mrf.mxu0  ;;  %v1634_v51 = vadd.f32 %v3000_v62, %v1633_v38 }
 0x2ac   : > { %v1618_v34 = vsel %vm1592_vm4, %v1589_v60, 0.0  ;;  %v1186_v9 = vadd.f32 %v1167_v8, %v1032_v50 }
 0x2ad   : > { %v1619_v0 = vadd.f32 %v1618_v34, %v1617_v26  ;;  %v1475_v17 = vpop.f32.mrf.mxu2  ;;  %v3569_v5 = vsel %vm1635_vm5, %v3000_v62, %v1634_v51 }
 0x2ae   : > { %v1340_v1 = vadd.f32 %v1321_v6, %v1186_v9  ;;  %v3571_v6 = vpop.permute.xlu1 %1748 }
 0x2b0   : > { %v1494_v37 = vadd.f32 %v1475_v17, %v1340_v1 }
 0x2b2   : > { %v1590_v44 = vadd.f32 %v1569_v21, %v1494_v37 }
 0x2b3   : > { %v1169_v28 = vpop.f32.mrf.mxu0 }
 0x2b4   : > { %v1620_v7 = vsel %vm1592_vm4, %v1590_v44, 0.0  ;;  %v1187_v57 = vadd.f32 %v1169_v28, %v1033_v27 }
 0x2b5   : > { %v1621_v10 = vadd.f32 %v1620_v7, %v1619_v0  ;;  %v1477_v41 = vpop.f32.mrf.mxu2 }
 0x2b6   : > { %v1341_v33 = vadd.f32 %v1323_v18, %v1187_v57  ;;  %v3629_v27 = vpop.permute.xlu1 %1760 }
 0x2b8   : > { %v1495_v36 = vadd.f32 %v1477_v41, %v1341_v33 }
 0x2ba   : > { %v1591_v12 = vadd.f32 %v1574_v43, %v1495_v36 }
 0x2bc   : > { %v1622_v49 = vsel %vm1592_vm4, %v1591_v12, 0.0 }
 0x2bd   : > { %v1623_v59 = vadd.f32 %v1622_v49, %v1621_v10 }
 0x2bf   : > { %v1624_v22 = vrot.slane %v1623_v59, 4 }
 0x2c1   : > { %v1625_v63 = vadd.f32 %v1624_v22, %v1623_v59  ;;  %v3651_v22 = vpop.permute.xlu1 %1772 }
 0x2c3   : > { %v1626_v26 = vrot.slane %v1625_v63, 2 }
 0x2c5   : > { %v1627_v4 = vadd.f32 %v1626_v26, %v1625_v63 }
 0x2c7   : > { %v1628_v23 = vrot.slane %v1627_v4, 1 }
 0x2c9   : > { %v1629_v50 = vadd.f32 %v1628_v23, %v1627_v4 }
 0x2cb   : > { %v1637_v8 = vmul.f32 %v3569_v5, %v1629_v50 }
 0x2cd   : > { %v3575_v34 = vsub.f32 %v3481_v19, %v1637_v8  ;;  %v3578_v9 = vsub.f32 %v3483_v24, %v1637_v8  ;;  %v3581_v0 = vsub.f32 %v3492_v45, %v1637_v8  ;;  %v3584_v17 = vsub.f32 %v3499_v16, %v1637_v8  ;;  %v3598_v24 = vpop.permute.xlu2 %1744 }
 0x2ce   : > { %v3587_v1 = vsub.f32 %v3508_v30, %v1637_v8  ;;  %v3590_v54 = vsub.f32 %v3516_v25, %v1637_v8  ;;  %v3593_v29 = vsub.f32 %v3524_v61, %v1637_v8  ;;  %v3596_v19 = vsub.f32 %v3532_v47, %v1637_v8 }
 0x2cf   : > { %v3601_v45 = vsub.f32 %v3538_v35, %v1637_v8  ;;  %v3604_v16 = vsub.f32 %v3543_v3, %v1637_v8  ;;  %v3607_v30 = vsub.f32 %v3548_v11, %v1637_v8  ;;  %v3610_v25 = vsub.f32 %v3553_v32, %v1637_v8  ;;  %v3625_v11 = vpop.permute.xlu0 %1736 }
 0x2d0   : > { %v3613_v61 = vsub.f32 %v3558_v56, %v1637_v8  ;;  %v3615_v37 = vsub.f32 %v1589_v60, %v1637_v8  ;;  %v3617_v47 = vsub.f32 %v1590_v44, %v1637_v8  ;;  %v3619_v21 = vsub.f32 %v1591_v12, %v1637_v8 }
 0x2d1   : > { %v1654_v35 = vmul.f32 %v3575_v34, %v3575_v34  ;;  %v1655_v3 = vmul.f32 %v3578_v9, %v3578_v9  ;;  %v1656_v32 = vmul.f32 %v3581_v0, %v3581_v0  ;;  %v1657_v56 = vmul.f32 %v3584_v17, %v3584_v17 }
 0x2d2   : > { %v1658_v7 = vmul.f32 %v3587_v1, %v3587_v1  ;;  %v1659_v10 = vmul.f32 %v3590_v54, %v3590_v54  ;;  %v1660_v36 = vmul.f32 %v3593_v29, %v3593_v29  ;;  %v1661_v49 = vmul.f32 %v3596_v19, %v3596_v19 }
 0x2d3   : > { %v1670_v60 = vsel %vm1592_vm4, %v1654_v35, 0.0  ;;  %v1671_v44 = vsel %vm1592_vm4, %v1655_v3, 0.0  ;;  %v1673_v57 = vsel %vm1592_vm4, %v1656_v32, 0.0  ;;  %v1675_v33 = vsel %vm1592_vm4, %v1657_v56, 0.0 }
 0x2d4   : > { %v1672_v28 = vadd.f32 %v1671_v44, %v1670_v60  ;;  %v1677_v40 = vsel %vm1592_vm4, %v1658_v7, 0.0  ;;  %v1679_v52 = vsel %vm1592_vm4, %v1659_v10, 0.0  ;;  %v1662_v38 = vmul.f32 %v3601_v45, %v3601_v45 }
 0x2d5   : > { %v3638_v18 = vpop.permute.xlu2 %1752  ;;  %v1681_v63 = vsel %vm1592_vm4, %v1660_v36, 0.0  ;;  %v1663_v51 = vmul.f32 %v3604_v16, %v3604_v16  ;;  %v1683_v4 = vsel %vm1592_vm4, %v1661_v49, 0.0  ;;  %v1664_v8 = vmul.f32 %v3607_v30, %v3607_v30 }
 0x2d6   : > { %v1674_v62 = vadd.f32 %v1673_v57, %v1672_v28  ;;  %v1685_v35 = vsel %vm1592_vm4, %v1662_v38, 0.0  ;;  %v1665_v32 = vmul.f32 %v3610_v25, %v3610_v25  ;;  %v1666_v28 = vmul.f32 %v3613_v61, %v3613_v61 }
 0x2d7   : > { %v3646_v12 = vpop.permute.xlu0 %1756  ;;  %v1687_v56 = vsel %vm1592_vm4, %v1663_v51, 0.0  ;;  %v1689_v7 = vsel %vm1592_vm4, %v1664_v8, 0.0  ;;  %v1667_v10 = vmul.f32 %v3615_v37, %v3615_v37  ;;  %v1668_v36 = vmul.f32 %v3617_v47, %v3617_v47 }
 0x2d8   : > { %v1676_v41 = vadd.f32 %v1675_v33, %v1674_v62  ;;  %v3672_v62 = vpop.permute.xlu1 %1784  ;;  %v1691_v33 = vsel %vm1592_vm4, %v1665_v32, 0.0 }
 0x2da   : > { %v1678_v43 = vadd.f32 %v1677_v40, %v1676_v41  ;;  %v1693_v40 = vsel %vm1592_vm4, %v1666_v28, 0.0 }
 0x2dc   : > { %v1680_v59 = vadd.f32 %v1679_v52, %v1678_v43  ;;  %v1669_v52 = vmul.f32 %v3619_v21, %v3619_v21 }
 0x2dd   : > { %v3659_v50 = vpop.permute.xlu2 %1764 }
 0x2de   : > { %v1682_v26 = vadd.f32 %v1681_v63, %v1680_v59  ;;  %v1695_v59 = vsel %vm1592_vm4, %v1667_v10, 0.0  ;;  %v1697_v63 = vsel %vm1592_vm4, %v1668_v36, 0.0 }
 0x2df   : > { %v3667_v44 = vpop.permute.xlu0 %1768 }
 0x2e0   : > { %v1684_v23 = vadd.f32 %v1683_v4, %v1682_v26  ;;  %v1699_v4 = vsel %vm1592_vm4, %v1669_v52, 0.0  ;;  %v1797_v8 = vpop.permute.xlu1 %1796 }
 0x2e2   : > { %v1686_v3 = vadd.f32 %v1685_v35, %v1684_v23 }
 0x2e4   : > { %v1688_v60 = vadd.f32 %v1687_v56, %v1686_v3 }
 0x2e5   : > { %v1777_v49 = vpop.permute.xlu2 %1776 }
 0x2e6   : > { %v1690_v57 = vadd.f32 %v1689_v7, %v1688_v60 }
 0x2e7   : > { %v1781_v51 = vpop.permute.xlu0 %1780 }
 0x2e8   : > { %v1692_v41 = vadd.f32 %v1691_v33, %v1690_v57  ;;  %v3685_v7 = vpop.permute.xlu1 %1872 }
 0x2ea   : > { %v1694_v43 = vadd.f32 %v1693_v40, %v1692_v41 }
 0x2ec   : > { %v1696_v38 = vadd.f32 %v1695_v59, %v1694_v43 }
 0x2ed   : > { %v1789_v32 = vpop.permute.xlu2 %1788 }
 0x2ee   : > { %v1698_v26 = vadd.f32 %v1697_v63, %v1696_v38 }
 0x2ef   : > { %v1793_v28 = vpop.permute.xlu0 %1792 }
 0x2f0   : > { %v1700_v23 = vadd.f32 %v1699_v4, %v1698_v26  ;;  %v1865_v43 = vpop.permute.xlu1 %1864 }
 0x2f2   : > { %v1701_v35 = vrot.slane %v1700_v23, 4 }
 0x2f4   : > { %v1702_v3 = vadd.f32 %v1701_v35, %v1700_v23 }
 0x2f5   : > { %v3688_v41 = vpop.permute.xlu2 %1816 }
 0x2f6   : > { %v1703_v56 = vrot.slane %v1702_v3, 2 }
 0x2f7   : > { %v3690_v40 = vpop.permute.xlu0 %1820 }
 0x2f8   : > { %v1704_v60 = vadd.f32 %v1703_v56, %v1702_v3  ;;  %v1861_v4 = vpop.permute.xlu1 %1860  ;;  %v3078_v3 = vmov 3  }
 0x2f9   : > { %2990 = vset.pattern.permute.xlu1 %v3078_v3  ;;  %2992 = vset.pattern.permute.xlu0 %v3078_v3 }
 0x2fa   : > { %v1705_v57 = vrot.slane %v1704_v60, 1  ;;  %1944 = vperm.xlu0 %2992, %v3332_v39   ;;  %2991 = vset.pattern.permute.xlu2 %v3078_v3 }
 0x2fb   : > { %1940 = vperm.xlu2 %2991, %v3348_v55  }
 0x2fc   : > { %v1706_v33 = vadd.f32 %v1705_v57, %v1704_v60  ;;  %v3695_v60 = vld [vmem:[%s4185_s3] sm:$0xff] }
 0x2fd   : > { %v1877_v59 = vpop.permute.xlu2 %1876  ;;  %1936 = vperm.xlu1 %2990, %v3695_v60  }
 0x2fe   : > { %v1707_v10 = vmul.f32 %v1706_v33, %v3569_v5 }
 0x2ff   : > { %v1857_v26 = vpop.permute.xlu0 %1856 }
 0x300   : > { %v1708_v36 = vadd.f32 1e-05, %v1707_v10 }
 0x302   : > { %3001 = vrsqrt.f32 %v1708_v36  ;;  %vm1715_vm7 = vweird.f32 %v1708_v36  ;;  %1964 = vperm.xlu0 %2992, %v3371_v14  }
 0x303   : > { %1952 = vperm.xlu2 %2991, %v3366_v13  }
 0x305   : > { %v1869_v57 = vpop.permute.xlu2 %1868  ;;  %1948 = vperm.xlu1 %2990, %v3340_v46  }
 0x308   : > { %v3002_v52 = vpop.eup %3001 }
 0x309   : > { %v1710_v38 = vmul.f32 %v3002_v52, %v1708_v36  ;;  %vm1716_vm6 = vweird.f32 %v3002_v52 }
 0x30a   : > { %vm1717_vm8 = vmor %vm1715_vm7, %vm1716_vm6  ;;  %1976 = vperm.xlu0 %2992, %v3408_v42  }
 0x30b   : > { %v1711_v63 = vmul.f32 %v3002_v52, %v1710_v38  ;;  %1960 = vperm.xlu2 %2991, %v3394_v31  }
 0x30d   : > { %v1712_v23 = vmul.f32 0.5, %v1711_v63  ;;  %v1853_v63 = vpop.permute.xlu0 %1852 }
 0x30f   : > { %v1713_v35 = vsub.f32 1.5, %v1712_v23  ;;  %v3707_v23 = vpop.permute.xlu1 %1840 }
 0x311   : > { %v1714_v56 = vmul.f32 %v3002_v52, %v1713_v35 }
 0x312   : > { %1988 = vperm.xlu0 %2992, %v3427_v58  }
 0x313   : > { %v3699_v33 = vsel %vm1717_vm8, %v3002_v52, %v1714_v56  ;;  %1972 = vperm.xlu2 %2991, %v3419_v53  }
 0x314   : > { %v1723_v10 = vmul.f32 %v3699_v33, %v3587_v1  ;;  %v1728_v36 = vmul.f32 %v3699_v33, %v3604_v16  ;;  %v1729_v39 = vmul.f32 %v3699_v33, %v3607_v30  ;;  %v1731_v52 = vmul.f32 %v3699_v33, %v3613_v61 }
 0x315   : > { %v1732_v55 = vmul.f32 %v3699_v33, %v3615_v37  ;;  %v1724_v1 = vmul.f32 %v3699_v33, %v3590_v54  ;;  %v1727_v16 = vmul.f32 %v3699_v33, %v3601_v45  ;;  %v1730_v35 = vmul.f32 %v3699_v33, %v3610_v25 }
 0x316   : > { %v1803_v38 = vmul.f32 %v3638_v18, %v1723_v10  ;;  %v1734_v18 = vmul.f32 %v3699_v33, %v3619_v21  ;;  %v1809_v30 = vmul.f32 %v1777_v49, %v1729_v39  ;;  %v1811_v61 = vmul.f32 %v3672_v62, %v1731_v52  ;;  %v1849_v10 = vpop.permute.xlu2 %1848 }
 0x317   : > { %v1812_v3 = vmul.f32 %v1789_v32, %v1732_v55  ;;  %v1808_v37 = vmul.f32 %v3651_v22, %v1728_v36  ;;  %v1807_v54 = vmul.f32 %v3667_v44, %v1727_v16  ;;  %v1810_v45 = vmul.f32 %v1781_v51, %v1730_v35  ;;  %v1833_v16 = vpop.permute.xlu0 %1832 }
 0x318   : > { %v1814_v56 = vmul.f32 %v1797_v8, %v1734_v18  ;;  %v1733_v21 = vmul.f32 %v3699_v33, %v3617_v47  ;;  %v1891_v46 = vadd.f32 %v1865_v43, %v1811_v61  ;;  %v1804_v49 = vmul.f32 %v3646_v12, %v1724_v1  ;;  %v1837_v47 = vpop.permute.xlu1 %1836  ;;  %v3736_v12 = vld [vmem:[%s4185_s3 + $0x28] sm:$0xff] }
 0x319   : > { %v1892_v25 = vadd.f32 %v1869_v57, %v1812_v3  ;;  %v1887_v32 = vadd.f32 %v1849_v10, %v1807_v54  ;;  %v1889_v39 = vadd.f32 %v1857_v26, %v1809_v30  ;;  %v1890_v51 = vadd.f32 %v1861_v4, %v1810_v45  ;;  %1956 = vperm.xlu1 %2990, %v3736_v12  }
 0x31a   : > { %v1894_v62 = vadd.f32 %v1877_v59, %v1814_v56  ;;  %v1813_v14 = vmul.f32 %v1793_v28, %v1733_v21  ;;  %v1907_v44 = vmax.f32 %v1891_v46, 0.0  ;;  %v1888_v55 = vadd.f32 %v1853_v63, %v1808_v37  ;;  %v2096_v46 = vld [vmem:[#allocation2] sm:$0xff] }
 0x31b   : > { %v1908_v22 = vmax.f32 %v1892_v25, 0.0  ;;  %v1903_v36 = vmax.f32 %v1887_v32, 0.0  ;;  %v1905_v13 = vmax.f32 %v1889_v39, 0.0  ;;  %v1883_v57 = vadd.f32 %v1833_v16, %v1803_v38  ;;  %1984 = vperm.xlu2 %2991, %v3435_v2   ;;  %2128 = vrot.lane.b32.xlu0 %v2096_v46, %s3070_s5  ;;  %v2099_v32 = vld [vmem:[#allocation2 + $0x18] sm:$0xff]  ;;  %v2938_v39 = vld [vmem:[%s4184_s2 + $0x8] sm:$0xff] }
 0x31c   : > { %v1910_v52 = vmax.f32 %v1894_v62, 0.0  ;;  %v1893_v8 = vadd.f32 %v3685_v7, %v1813_v14  ;;  %v1884_v18 = vadd.f32 %v1837_v47, %v1804_v49  ;;  %v1906_v43 = vmax.f32 %v1890_v51, 0.0  ;;  %v2097_v49 = vld [vmem:[#allocation2 + $0x8] sm:$0xff]  ;;  %v2937_v62 = vld [vmem:[%s4184_s2] sm:$0xff]  ;;  %v2098_v14 = vld [vmem:[#allocation2 + $0x10] sm:$0xff] }
 0x31d   : > { %v1904_v59 = vmax.f32 %v1888_v55, 0.0  ;;  %v1725_v7 = vmul.f32 %v3699_v33, %v3593_v29  ;;  %v1726_v26 = vmul.f32 %v3699_v33, %v3596_v19  ;;  %v1899_v4 = vmax.f32 %v1883_v57, 0.0  ;;  %v2105_v51 = vld [vmem:[#allocation2 + $0x48] sm:$0xff]  ;;  %v2941_v55 = vld [vmem:[%s4184_s2 + $0x20] sm:$0xff] }
 0x31e   : > { %v1909_v28 = vmax.f32 %v1893_v8, 0.0  ;;  %v1900_v38 = vmax.f32 %v1884_v18, 0.0  ;;  %v1933_v1 = vpack.c.bf16 %v1908_v22, %v1907_v44  ;;  %v1932_v35 = vpack.c.bf16 %v1906_v43, %v1905_v13  ;;  %v1845_v37 = vpop.permute.xlu2 %1844  ;;  %v2102_v22 = vld [vmem:[#allocation2 + $0x30] sm:$0xff]  ;;  %v2940_v44 = vld [vmem:[%s4184_s2 + $0x18] sm:$0xff]  ;;  %v2101_v8 = vld [vmem:[#allocation2 + $0x28] sm:$0xff] }
 0x31f   : > { %v1931_v30 = vpack.c.bf16 %v1904_v59, %v1903_v36  ;;  %v1805_v3 = vmul.f32 %v3629_v27, %v1725_v7  ;;  %v1806_v42 = vmul.f32 %v3659_v50, %v1726_v26  ;;  %v1721_v31 = vmul.f32 %v3699_v33, %v3581_v0  ;;  %v3764_v0 = vld [vmem:[%s4185_s3 + $0x58] sm:$0xff]  ;;  %v2106_v13 = vld [vmem:[#allocation2 + $0x50] sm:$0xff]  ;;  %v2109_v16 = vld [vmem:[#allocation2 + $0x68] sm:$0xff] }
 0x320   : > { %v1934_v63 = vpack.c.bf16 %v1910_v52, %v1909_v28  ;;  %v1929_v61 = vpack.c.bf16 %v1900_v38, %v1899_v4  ;;  %v1722_v29 = vmul.f32 %v3699_v33, %v3584_v17  ;;  %v1720_v27 = vmul.f32 %v3699_v33, %v3578_v9  ;;  %v2939_v52 = vld [vmem:[%s4184_s2 + $0x10] sm:$0xff]  ;;  %v2103_v36 = vld [vmem:[#allocation2 + $0x38] sm:$0xff]  ;;  %v2104_v57 = vld [vmem:[#allocation2 + $0x40] sm:$0xff] }
 0x321   : > { %1968 = vperm.xlu1 %2990, %v3378_v20   ;;  %v1886_v19 = vadd.f32 %v1845_v37, %v1806_v42  ;;  %v1885_v54 = vadd.f32 %v3707_v23, %v1805_v3  ;;  %v1719_v20 = vmul.f32 %v3699_v33, %v3575_v34  ;;  %v1801_v58 = vmul.f32 %v3598_v24, %v1721_v31  ;;  %v1829_v23 = vpop.permute.xlu0 %1828  ;;  %v2942_v18 = vld [vmem:[%s4184_s2 + $0x28] sm:$0xff]  ;;  %v3009_v28 = vld [vmem:[%s4185_s3 + $0x18] sm:$0xff]  ;;  %v2108_v59 = vld [vmem:[#allocation2 + $0x60] sm:$0xff] }
 0x322   : > { %2047 = vmatpush.bf16.msrb.mxu3 %v1934_v63  ;;  %v1802_v53 = vmul.f32 %v3571_v6, %v1722_v29  ;;  %v1800_v17 = vmul.f32 %v3567_v48, %v1720_v27  ;;  %v3775_v48 = vld [vmem:[%s4185_s3 + $0x70] sm:$0xff]  ;;  %v3079_v47 = vmov 4   ;;  %v2107_v7 = vld [vmem:[#allocation2 + $0x58] sm:$0xff]  ;;  %v3012_v37 = vld [vmem:[%s4185_s3 + $0x8] sm:$0xff] }
 0x323   : > { %v1902_v50 = vmax.f32 %v1886_v19, 0.0  ;;  %v1901_v56 = vmax.f32 %v1885_v54, 0.0  ;;  %v1799_v34 = vmul.f32 %v3625_v11, %v1719_v20  ;;  %1996 = vperm.xlu2 %2991, %v3446_v15   ;;  %2134 = vrot.lane.b32.xlu0 %v2099_v32, %s3070_s5  ;;  %v2100_v15 = vld [vmem:[#allocation2 + $0x20] sm:$0xff]  ;;  %v2943_v38 = vld [vmem:[%s4184_s2 + $0x30] sm:$0xff]  ;;  %v2111_v63 = vld [vmem:[#allocation2 + $0x78] sm:$0xff] }
 0x324   : > { %v1882_v6 = vadd.f32 %v1829_v23, %v1802_v53  ;;  %v1880_v21 = vadd.f32 %v3690_v40, %v1800_v17  ;;  %2995 = vset.pattern.permute.xlu0 %v3079_v47  ;;  %v3011_v42 = vld [vmem:[%s4185_s3 + $0x10] sm:$0xff]  ;;  %v2944_v19 = vld [vmem:[%s4184_s2 + $0x38] sm:$0xff]  ;;  %v3014_v20 = vld [vmem:[%s4185_s3 + $0x20] sm:$0xff] }
 0x325   : > { %v1930_v33 = vpack.c.bf16 %v1902_v50, %v1901_v56  ;;  %v1879_v45 = vadd.f32 %v3688_v41, %v1799_v34  ;;  %v3852_v27 = vld [vmem:[%s4185_s3 + $0x38] sm:$0xff]  ;;  %v3866_v50 = vld [vmem:[%s4185_s3 + $0x50] sm:$0xff]  ;;  %v3017_v23 = vld [vmem:[%s4185_s3 + $0x68] sm:$0xff] }
 0x326   : > { %2048 = vmatpush.bf16.msrb.mxu3 %v1933_v1  ;;  %v1825_v9 = vpop.permute.xlu2 %1824  ;;  %v1898_v10 = vmax.f32 %v1882_v6, 0.0  ;;  %v1896_v11 = vmax.f32 %v1880_v21, 0.0  ;;  %v2110_v1 = vld [vmem:[#allocation2 + $0x70] sm:$0xff]  ;;  %v3018_v34 = vld [vmem:[%s4185_s3 + $0x48] sm:$0xff]  ;;  %v3019_v21 = vld [vmem:[%s4185_s3 + $0x60] sm:$0xff] }
 0x327   : > { %v1881_v24 = vadd.f32 %v1825_v9, %v1801_v58  ;;  %v1895_v2 = vmax.f32 %v1879_v45, 0.0  ;;  %v3016_v56 = vld [vmem:[%s4185_s3 + $0x30] sm:$0xff]  ;;  %v3080_v9 = vmov 5  }
 0x329   : > { %1980 = vperm.xlu1 %2990, %v3764_v0   ;;  %v1897_v25 = vmax.f32 %v1881_v24, 0.0  ;;  %v1927_v40 = vpack.c.bf16 %v1896_v11, %v1895_v2 }
 0x32a   : > { %2049 = vmatpush.bf16.msrb.mxu3 %v1932_v35  ;;  %v3826_v35 = vld [vmem:[%s4185_s3 + $0x40] sm:$0xff] }
 0x32b   : > { %v1928_v41 = vpack.c.bf16 %v1898_v10, %v1897_v25  ;;  %2132 = vrot.lane.b32.xlu2 %v2098_v14, %s3070_s5  ;;  %2140 = vrot.lane.b32.xlu0 %v2102_v22, %s3070_s5 }
 0x32c   : > { %2994 = vset.pattern.permute.xlu2 %v3079_v47 }
 0x32e   : > { %2050 = vmatpush.bf16.msrb.mxu3 %v1931_v30 }
 0x331   : > { %1992 = vperm.xlu1 %2990, %v3775_v48  }
 0x332   : > { %2051 = vmatpush.bf16.msrb.mxu3 %v1930_v33 }
 0x333   : > { %2138 = vrot.lane.b32.xlu2 %v2101_v8, %s3070_s5  ;;  %2146 = vrot.lane.b32.xlu0 %v2105_v51, %s3070_s5 }
 0x336   : > { %2052 = vmatpush.bf16.msrb.mxu3 %v1929_v61 }
 0x339   : > { %2130 = vrot.lane.b32.xlu1 %v2097_v49, %s3070_s5 }
 0x33a   : > { %2053 = vmatpush.bf16.msrb.mxu3 %v1928_v41  ;;  %2993 = vset.pattern.permute.xlu1 %v3079_v47 }
 0x33b   : > { %2144 = vrot.lane.b32.xlu2 %v2104_v57, %s3070_s5  ;;  %2152 = vrot.lane.b32.xlu0 %v2108_v59, %s3070_s5 }
 0x33e   : > { %2054 = vmatpush.bf16.msrb.mxu3 %v1927_v40 }
 0x341   : > { %2055 = vmatmul.bf16.vlgmr.msrb.gmra.mxu3 %v2937_v62  ;;  %2136 = vrot.lane.b32.xlu1 %v2100_v15, %s3070_s5  ;;  %v3020_v62 = vld [vmem:[%s4185_s3 + $0x78] sm:$0xff] }
 0x343   : > { %2150 = vrot.lane.b32.xlu2 %v2107_v7, %s3070_s5  ;;  %2158 = vrot.lane.b32.xlu0 %v2111_v63, %s3070_s5 }
 0x349   : > { %2142 = vrot.lane.b32.xlu1 %v2103_v36, %s3070_s5 }
 0x34b   : > { %2156 = vrot.lane.b32.xlu2 %v2110_v1, %s3070_s5  ;;  %2336 = vperm.xlu0 %2995, %v3011_v42  }
 0x351   : > { %2060 = vmatmul.bf16.gmra.mxu3 %v2938_v39  ;;  %2148 = vrot.lane.b32.xlu1 %v2106_v13, %s3070_s5 }
 0x353   : > { %2332 = vperm.xlu2 %2994, %v3012_v37   ;;  %2356 = vperm.xlu0 %2995, %v3852_v27  }
 0x355   : > { %v1941_v26 = vpop.permute.xlu2 %1940 }
 0x359   : > { %2154 = vrot.lane.b32.xlu1 %v2109_v16, %s3070_s5 }
 0x35b   : > { %2344 = vperm.xlu2 %2994, %v3014_v20   ;;  %2368 = vperm.xlu0 %2995, %v3866_v50  }
 0x35d   : > { %v3829_v30 = vpop.permute.xlu2 %1952 }
 0x361   : > { %2065 = vmatmul.bf16.gmra.mxu3 %v2939_v52  ;;  %2328 = vperm.xlu1 %2993, %v3695_v60  }
 0x363   : > { %2352 = vperm.xlu2 %2994, %v3016_v56   ;;  %2380 = vperm.xlu0 %2995, %v3017_v23  }
 0x365   : > { %v3840_v31 = vpop.permute.xlu2 %1960 }
 0x369   : > { %2340 = vperm.xlu1 %2993, %v3009_v28  }
 0x36b   : > { %2364 = vperm.xlu2 %2994, %v3018_v34   ;;  %2996 = vset.pattern.permute.xlu0 %v3080_v9 }
 0x36c   : > { %v1945_v61 = vpop.permute.xlu0 %1944  ;;  %2408 = vperm.xlu0 %2996, %v3695_v60  }
 0x36d   : > { %v3859_v58 = vpop.permute.xlu2 %1972 }
 0x36f   : > { %v1937_v43 = vpop.permute.xlu1 %1936 }
 0x371   : > { %2070 = vmatmul.bf16.gmra.mxu3 %v2940_v44  ;;  %2348 = vperm.xlu1 %2993, %v3736_v12  }
 0x373   : > { %2376 = vperm.xlu2 %2994, %v3019_v21  }
 0x374   : > { %v3842_v29 = vpop.permute.xlu0 %1964  ;;  %2428 = vperm.xlu0 %2996, %v3736_v12  }
 0x375   : > { %v3880_v24 = vpop.permute.xlu2 %1984 }
 0x377   : > { %v3816_v4 = vpop.permute.xlu1 %1948 }
 0x379   : > { %2360 = vperm.xlu1 %2993, %v3826_v35  }
 0x37b   : > { %2388 = vperm.xlu2 %2994, %v3020_v62  }
 0x37c   : > { %v3861_v53 = vpop.permute.xlu0 %1976  ;;  %2440 = vperm.xlu0 %2996, %v3826_v35  }
 0x37d   : > { %v3890_v10 = vpop.permute.xlu2 %1996 }
 0x381   : > { %2075 = vmatmul.bf16.gmra.mxu3 %v2941_v55  ;;  %2372 = vperm.xlu1 %2993, %v3764_v0  }
 0x383   : > { %2998 = vset.pattern.permute.xlu2 %v3080_v9 }
 0x384   : > { %v3882_v6 = vpop.permute.xlu0 %1988  ;;  %2416 = vperm.xlu2 %2998, %v3011_v42   ;;  %2452 = vperm.xlu0 %2996, %v3764_v0  }
 0x385   : > { %v2133_v14 = vpop.permute.xlu2 %2132 }
 0x389   : > { %2384 = vperm.xlu1 %2993, %v3775_v48  }
 0x38b   : > { %v3831_v3 = vpop.permute.xlu1 %1956 }
 0x38c   : > { %2424 = vperm.xlu2 %2998, %v3014_v20   ;;  %2464 = vperm.xlu0 %2996, %v3775_v48  }
 0x38d   : > { %v2129_v46 = vpop.permute.xlu0 %2128  ;;  %v2139_v35 = vpop.permute.xlu2 %2138 }
 0x391   : > { %2080 = vmatmul.bf16.gmra.mxu3 %v2942_v18  ;;  %2997 = vset.pattern.permute.xlu1 %v3080_v9 }
 0x392   : > { %2412 = vperm.xlu1 %2997, %v3012_v37  }
 0x393   : > { %v3847_v54 = vpop.permute.xlu1 %1968 }
 0x394   : > { %2436 = vperm.xlu2 %2998, %v3852_v27  }
 0x395   : > { %v2135_v8 = vpop.permute.xlu0 %2134 }
 0x39a   : > { %2420 = vperm.xlu1 %2997, %v3009_v28  }
 0x39b   : > { %v3872_v17 = vpop.permute.xlu1 %1980 }
 0x39c   : > { %2448 = vperm.xlu2 %2998, %v3866_v50  }
 0x3a1   : > { %2085 = vmatmul.bf16.gmra.mxu3 %v2943_v38 }
 0x3a2   : > { %2432 = vperm.xlu1 %2997, %v3016_v56  }
 0x3a3   : > { %v3884_v33 = vpop.permute.xlu1 %1992 }
 0x3a4   : > { %2460 = vperm.xlu2 %2998, %v3017_v23  }
 0x3aa   : > { %2444 = vperm.xlu1 %2997, %v3018_v34  }
 0x3ab   : > { %v2131_v11 = vpop.permute.xlu1 %2130 }
 0x3b1   : > { %2090 = vmatmul.bf16.gmra.mxu3 %v2944_v19  ;;  %v2145_v19 = vpop.permute.xlu2 %2144 }
 0x3b2   : > { %2456 = vperm.xlu1 %2997, %v3019_v21  }
 0x3b3   : > { %v2137_v57 = vpop.permute.xlu1 %2136 }
 0x3ba   : > { %2468 = vperm.xlu1 %2997, %v3020_v62  }
 0x3bb   : > { %v2143_v42 = vpop.permute.xlu1 %2142 }
 0x3c4   : > { %v2056_v45 = vpop.f32.mrf.mxu3 }
 0x3c5   : > { %v2057_v25 = vadd.f32 %v2056_v45, %v1937_v43  ;;  %v2149_v45 = vpop.permute.xlu1 %2148 }
 0x3c7   : > { %v3892_v40 = vadd.f32 %v2129_v46, %v2057_v25  ;;  %v2151_v46 = vpop.permute.xlu2 %2150 }
 0x3c9   : > { %v2192_v60 = vsel %vm1592_vm4, %v3892_v40, 0.0 }
 0x3cc   : > { %v2058_v2 = vpop.f32.mrf.mxu3 }
 0x3cd   : > { %v2059_v41 = vadd.f32 %v2058_v2, %v1941_v26 }
 0x3cf   : > { %v3894_v49 = vadd.f32 %v2131_v11, %v2059_v41 }
 0x3d1   : > { %v2193_v32 = vsel %vm1592_vm4, %v3894_v49, 0.0 }
 0x3d2   : > { %v2194_v39 = vadd.f32 %v2193_v32, %v2192_v60 }
 0x3d4   : > { %v2061_v15 = vpop.f32.mrf.mxu3 }
 0x3d5   : > { %v2062_v52 = vadd.f32 %v2061_v15, %v1945_v61 }
 0x3d7   : > { %v3904_v22 = vadd.f32 %v2133_v14, %v2062_v52 }
 0x3d9   : > { %v2195_v36 = vsel %vm1592_vm4, %v3904_v22, 0.0 }
 0x3da   : > { %v2196_v12 = vadd.f32 %v2195_v36, %v2194_v39 }
 0x3dc   : > { %v2063_v44 = vpop.f32.mrf.mxu3 }
 0x3dd   : > { %v2064_v13 = vadd.f32 %v2063_v44, %v3816_v4 }
 0x3df   : > { %v3910_v51 = vadd.f32 %v2135_v8, %v2064_v13  ;;  %v2155_v8 = vpop.permute.xlu1 %2154 }
 0x3e1   : > { %v2197_v55 = vsel %vm1592_vm4, %v3910_v51, 0.0 }
 0x3e2   : > { %v2198_v16 = vadd.f32 %v2197_v55, %v2196_v12 }
 0x3e4   : > { %v2066_v47 = vpop.f32.mrf.mxu3 }
 0x3e5   : > { %v2067_v18 = vadd.f32 %v2066_v47, %v3829_v30  ;;  %v2141_v30 = vpop.permute.xlu0 %2140  ;;  %v2157_v47 = vpop.permute.xlu2 %2156 }
 0x3e7   : > { %v3916_v28 = vadd.f32 %v2137_v57, %v2067_v18 }
 0x3e9   : > { %v2199_v43 = vsel %vm1592_vm4, %v3916_v28, 0.0 }
 0x3ea   : > { %v2200_v59 = vadd.f32 %v2199_v43, %v2198_v16 }
 0x3ec   : > { %v2068_v7 = vpop.f32.mrf.mxu3 }
 0x3ed   : > { %v2069_v61 = vadd.f32 %v2068_v7, %v3831_v3  ;;  %v2147_v9 = vpop.permute.xlu0 %2146 }
 0x3ef   : > { %v3926_v20 = vadd.f32 %v2139_v35, %v2069_v61 }
 0x3f1   : > { %v2201_v34 = vsel %vm1592_vm4, %v3926_v20, 0.0 }
 0x3f4   : > { %v2071_v0 = vpop.f32.mrf.mxu3 }
 0x3f5   : > { %v2072_v48 = vadd.f32 %v2071_v0, %v3840_v31  ;;  %v2153_v39 = vpop.permute.xlu0 %2152 }
 0x3f7   : > { %v3929_v56 = vadd.f32 %v2141_v30, %v2072_v48 }
 0x3fc   : > { %v2073_v26 = vpop.f32.mrf.mxu3 }
 0x3fd   : > { %v2074_v27 = vadd.f32 %v2073_v26, %v3842_v29  ;;  %v2203_v29 = vsel %vm1592_vm4, %v3929_v56, 0.0 }
 0x3ff   : > { %v3934_v3 = vadd.f32 %v2143_v42, %v2074_v27 }
 0x404   : > { %v2076_v4 = vpop.f32.mrf.mxu3 }
 0x405   : > { %v2077_v50 = vadd.f32 %v2076_v4, %v3847_v54  ;;  %v2202_v54 = vadd.f32 %v2201_v34, %v2200_v59 }
 0x407   : > { %v3939_v25 = vadd.f32 %v2145_v19, %v2077_v50  ;;  %v2204_v41 = vadd.f32 %v2203_v29, %v2202_v54  ;;  %v3982_v50 = vpop.permute.xlu2 %2332 }
 0x40c   : > { %v2078_v38 = vpop.f32.mrf.mxu3 }
 0x40d   : > { %v2079_v23 = vadd.f32 %v2078_v38, %v3859_v58  ;;  %v2205_v58 = vsel %vm1592_vm4, %v3934_v3, 0.0  ;;  %v2159_v38 = vpop.permute.xlu0 %2158 }
 0x40e   : > { %v2206_v32 = vadd.f32 %v2205_v58, %v2204_v41 }
 0x40f   : > { %v3944_v11 = vadd.f32 %v2147_v9, %v2079_v23 }
 0x414   : > { %v2081_v63 = vpop.f32.mrf.mxu3 }
 0x415   : > { %v2082_v31 = vadd.f32 %v2081_v63, %v3861_v53  ;;  %v2207_v53 = vsel %vm1592_vm4, %v3939_v25, 0.0 }
 0x416   : > { %v2208_v52 = vadd.f32 %v2207_v53, %v2206_v32 }
 0x417   : > { %v3949_v60 = vadd.f32 %v2149_v45, %v2082_v31 }
 0x419   : > { %v2211_v12 = vsel %vm1592_vm4, %v3949_v60, 0.0 }
 0x41c   : > { %v2083_v1 = vpop.f32.mrf.mxu3 }
 0x41d   : > { %v2084_v2 = vadd.f32 %v2083_v1, %v3872_v17  ;;  %v2209_v17 = vsel %vm1592_vm4, %v3944_v11, 0.0  ;;  %v3976_v1 = vpop.permute.xlu1 %2328 }
 0x41e   : > { %v2210_v13 = vadd.f32 %v2209_v17, %v2208_v52 }
 0x41f   : > { %v3954_v14 = vadd.f32 %v2151_v46, %v2084_v2  ;;  %v4002_v46 = vpop.permute.xlu2 %2344 }
 0x420   : > { %v2212_v16 = vadd.f32 %v2211_v12, %v2210_v13 }
 0x421   : > { %v2213_v55 = vsel %vm1592_vm4, %v3954_v14, 0.0 }
 0x422   : > { %v2214_v43 = vadd.f32 %v2213_v55, %v2212_v16 }
 0x424   : > { %v2086_v37 = vpop.f32.mrf.mxu3 }
 0x425   : > { %v2087_v62 = vadd.f32 %v2086_v37, %v3880_v24  ;;  %v3980_v19 = vpop.permute.xlu1 %2340 }
 0x427   : > { %v3959_v44 = vadd.f32 %v2153_v39, %v2087_v62 }
 0x429   : > { %v2215_v57 = vsel %vm1592_vm4, %v3959_v44, 0.0 }
 0x42a   : > { %v2216_v59 = vadd.f32 %v2215_v57, %v2214_v43 }
 0x42c   : > { %v2088_v21 = vpop.f32.mrf.mxu3 }
 0x42d   : > { %v2089_v15 = vadd.f32 %v2088_v21, %v3882_v6  ;;  %v4000_v54 = vpop.permute.xlu1 %2348 }
 0x42f   : > { %v3963_v6 = vadd.f32 %v2155_v8, %v2089_v15 }
 0x434   : > { %v2091_v36 = vpop.f32.mrf.mxu3 }
 0x435   : > { %v2092_v24 = vadd.f32 %v2091_v36, %v3884_v33  ;;  %v2217_v33 = vsel %vm1592_vm4, %v3963_v6, 0.0  ;;  %v4023_v15 = vpop.permute.xlu1 %2360  ;;  %v4031_v36 = vpop.permute.xlu2 %2352 }
 0x436   : > { %v2218_v4 = vadd.f32 %v2217_v33, %v2216_v59 }
 0x437   : > { %v3967_v18 = vadd.f32 %v2157_v47, %v2092_v24 }
 0x439   : > { %v2219_v0 = vsel %vm1592_vm4, %v3967_v18, 0.0 }
 0x43a   : > { %v2220_v35 = vadd.f32 %v2219_v0, %v2218_v4 }
 0x43c   : > { %v2093_v7 = vpop.f32.mrf.mxu3 }
 0x43d   : > { %v2094_v26 = vadd.f32 %v2093_v7, %v3890_v10  ;;  %v4059_v4 = vpop.permute.xlu1 %2372 }
 0x43f   : > { %v3974_v63 = vadd.f32 %v2159_v38, %v2094_v26 }
 0x441   : > { %v2221_v30 = vsel %vm1592_vm4, %v3974_v63, 0.0 }
 0x442   : > { %v2222_v61 = vadd.f32 %v2221_v30, %v2220_v35  ;;  %v4067_v30 = vpop.permute.xlu2 %2364 }
 0x444   : > { %v2223_v42 = vrot.slane %v2222_v61, 4 }
 0x446   : > { %v2224_v37 = vadd.f32 %v2223_v42, %v2222_v61 }
 0x448   : > { %v2225_v48 = vrot.slane %v2224_v37, 2 }
 0x44a   : > { %v2226_v27 = vadd.f32 %v2225_v48, %v2224_v37 }
 0x44c   : > { %v2227_v10 = vrot.slane %v2226_v27, 1 }
 0x44e   : > { %v2228_v9 = vadd.f32 %v2227_v10, %v2226_v27 }
 0x450   : > { %v2229_v23 = vmul.f32 %v2228_v9, %v3569_v5 }
 0x452   : > { %v3986_v34 = vsub.f32 %v3892_v40, %v2229_v23  ;;  %v3989_v45 = vsub.f32 %v3894_v49, %v2229_v23  ;;  %v3992_v21 = vsub.f32 %v3904_v22, %v2229_v23  ;;  %v3995_v31 = vsub.f32 %v3910_v51, %v2229_v23 }
 0x453   : > { %v3998_v29 = vsub.f32 %v3916_v28, %v2229_v23  ;;  %v4011_v2 = vsub.f32 %v3926_v20, %v2229_v23  ;;  %v4018_v62 = vsub.f32 %v3929_v56, %v2229_v23  ;;  %v4026_v20 = vsub.f32 %v3934_v3, %v2229_v23  ;;  %v4033_v56 = vpop.permute.xlu0 %2336 }
 0x454   : > { %v2246_v40 = vmul.f32 %v3986_v34, %v3986_v34  ;;  %v2247_v49 = vmul.f32 %v3989_v45, %v3989_v45  ;;  %v2248_v22 = vmul.f32 %v3992_v21, %v3992_v21  ;;  %v2249_v51 = vmul.f32 %v3995_v31, %v3995_v31 }
 0x455   : > { %v2250_v53 = vmul.f32 %v3998_v29, %v3998_v29  ;;  %v2251_v17 = vmul.f32 %v4011_v2, %v4011_v2  ;;  %v4036_v24 = vsub.f32 %v3939_v25, %v2229_v23  ;;  %v2252_v8 = vmul.f32 %v4018_v62, %v4018_v62 }
 0x456   : > { %v2262_v28 = vsel %vm1592_vm4, %v2246_v40, 0.0  ;;  %v2263_v58 = vsel %vm1592_vm4, %v2247_v49, 0.0  ;;  %v2265_v32 = vsel %vm1592_vm4, %v2248_v22, 0.0  ;;  %v2267_v52 = vsel %vm1592_vm4, %v2249_v51, 0.0 }
 0x457   : > { %v2264_v41 = vadd.f32 %v2263_v58, %v2262_v28  ;;  %v2269_v13 = vsel %vm1592_vm4, %v2250_v53, 0.0  ;;  %v4042_v55 = vsub.f32 %v3944_v11, %v2229_v23  ;;  %v2253_v16 = vmul.f32 %v4026_v20, %v4026_v20 }
 0x458   : > { %v2271_v47 = vsel %vm1592_vm4, %v2251_v17, 0.0  ;;  %v4048_v43 = vsub.f32 %v3949_v60, %v2229_v23  ;;  %v2254_v25 = vmul.f32 %v4036_v24, %v4036_v24  ;;  %v2273_v33 = vsel %vm1592_vm4, %v2252_v8, 0.0 }
 0x459   : > { %v2266_v39 = vadd.f32 %v2265_v32, %v2264_v41  ;;  %v4054_v7 = vsub.f32 %v3954_v14, %v2229_v23  ;;  %v2255_v11 = vmul.f32 %v4042_v55, %v4042_v55  ;;  %v2275_v0 = vsel %vm1592_vm4, %v2253_v16, 0.0  ;;  %v4092_v41 = vpop.permute.xlu1 %2384 }
 0x45a   : > { %v4062_v60 = vsub.f32 %v3959_v44, %v2229_v23  ;;  %v2256_v38 = vmul.f32 %v4048_v43, %v4048_v43  ;;  %v2277_v35 = vsel %vm1592_vm4, %v2254_v25, 0.0  ;;  %v4072_v42 = vsub.f32 %v3963_v6, %v2229_v23 }
 0x45b   : > { %v2268_v12 = vadd.f32 %v2267_v52, %v2266_v39  ;;  %v4069_v14 = vpop.permute.xlu0 %2356  ;;  %v2257_v37 = vmul.f32 %v4054_v7, %v4054_v7  ;;  %v2279_v48 = vsel %vm1592_vm4, %v2255_v11, 0.0  ;;  %v4078_v27 = vsub.f32 %v3967_v18, %v2229_v23 }
 0x45c   : > { %v2258_v10 = vmul.f32 %v4062_v60, %v4062_v60  ;;  %v2281_v9 = vsel %vm1592_vm4, %v2256_v38, 0.0  ;;  %v4084_v49 = vsub.f32 %v3974_v63, %v2229_v23  ;;  %v2259_v6 = vmul.f32 %v4072_v42, %v4072_v42  ;;  %v4097_v23 = vpop.permute.xlu2 %2376 }
 0x45d   : > { %v2270_v3 = vadd.f32 %v2269_v13, %v2268_v12  ;;  %v2283_v22 = vsel %vm1592_vm4, %v2257_v37, 0.0  ;;  %v2260_v28 = vmul.f32 %v4078_v27, %v4078_v27 }
 0x45e   : > { %v2285_v18 = vsel %vm1592_vm4, %v2258_v10, 0.0  ;;  %v2261_v53 = vmul.f32 %v4084_v49, %v4084_v49  ;;  %v2287_v63 = vsel %vm1592_vm4, %v2259_v6, 0.0 }
 0x45f   : > { %v2272_v57 = vadd.f32 %v2271_v47, %v2270_v3  ;;  %v2289_v17 = vsel %vm1592_vm4, %v2260_v28, 0.0 }
 0x460   : > { %v2291_v12 = vsel %vm1592_vm4, %v2261_v53, 0.0 }
 0x461   : > { %v2274_v59 = vadd.f32 %v2273_v33, %v2272_v57  ;;  %v2413_v16 = vpop.permute.xlu1 %2412 }
 0x463   : > { %v2276_v26 = vadd.f32 %v2275_v0, %v2274_v59  ;;  %v4099_v32 = vpop.permute.xlu0 %2368 }
 0x464   : > { %v4103_v47 = vpop.permute.xlu2 %2388 }
 0x465   : > { %v2278_v61 = vadd.f32 %v2277_v35, %v2276_v26 }
 0x467   : > { %v2280_v44 = vadd.f32 %v2279_v48, %v2278_v61 }
 0x469   : > { %v2282_v40 = vadd.f32 %v2281_v9, %v2280_v44  ;;  %v2421_v38 = vpop.permute.xlu1 %2420 }
 0x46b   : > { %v2284_v51 = vadd.f32 %v2283_v22, %v2282_v40  ;;  %v4105_v57 = vpop.permute.xlu0 %2380 }
 0x46c   : > { %v2417_v0 = vpop.permute.xlu2 %2416 }
 0x46d   : > { %v2286_v58 = vadd.f32 %v2285_v18, %v2284_v51 }
 0x46f   : > { %v2288_v39 = vadd.f32 %v2287_v63, %v2286_v58 }
 0x471   : > { %v2290_v52 = vadd.f32 %v2289_v17, %v2288_v39  ;;  %v2433_v44 = vpop.permute.xlu1 %2432 }
 0x473   : > { %v2292_v8 = vadd.f32 %v2291_v12, %v2290_v52  ;;  %v2409_v35 = vpop.permute.xlu0 %2408 }
 0x474   : > { %v2425_v37 = vpop.permute.xlu2 %2424 }
 0x475   : > { %v2293_v13 = vrot.slane %v2292_v8, 4 }
 0x477   : > { %v2294_v3 = vadd.f32 %v2293_v13, %v2292_v8 }
 0x479   : > { %v2295_v25 = vrot.slane %v2294_v3, 2  ;;  %v2445_v18 = vpop.permute.xlu1 %2444 }
 0x47b   : > { %v2296_v33 = vadd.f32 %v2295_v25, %v2294_v3  ;;  %v2429_v9 = vpop.permute.xlu0 %2428 }
 0x47c   : > { %v2437_v28 = vpop.permute.xlu2 %2436 }
 0x47d   : > { %v2297_v59 = vrot.slane %v2296_v33, 1 }
 0x47f   : > { %v2298_v11 = vadd.f32 %v2297_v59, %v2296_v33 }
 0x481   : > { %v2299_v26 = vmul.f32 %v2298_v11, %v3569_v5 }
 0x483   : > { %v2300_v61 = vadd.f32 1e-05, %v2299_v26  ;;  %v2441_v58 = vpop.permute.xlu0 %2440 }
 0x485   : > { %3003 = vrsqrt.f32 %v2300_v61  ;;  %vm2307_vm10 = vweird.f32 %v2300_v61 }
 0x48b   : > { %v3004_v48 = vpop.eup %3003 }
 0x48c   : > { %v2302_v10 = vmul.f32 %v3004_v48, %v2300_v61  ;;  %vm2308_vm9 = vweird.f32 %v3004_v48 }
 0x48d   : > { %vm2309_vm11 = vmor %vm2307_vm10, %vm2308_vm9 }
 0x48e   : > { %v2303_v40 = vmul.f32 %v3004_v48, %v2302_v10 }
 0x490   : > { %v2304_v6 = vmul.f32 0.5, %v2303_v40 }
 0x492   : > { %v2305_v22 = vsub.f32 1.5, %v2304_v6 }
 0x494   : > { %v2306_v51 = vmul.f32 %v3004_v48, %v2305_v22 }
 0x496   : > { %v2310_v5 = vsel %vm2309_vm11, %v3004_v48, %v2306_v51 }
 0x497   : > { %v2311_v53 = vmul.f32 %v2310_v5, %v3986_v34  ;;  %v2312_v63 = vmul.f32 %v2310_v5, %v3989_v45  ;;  %v2314_v39 = vmul.f32 %v2310_v5, %v3995_v31  ;;  %v2315_v17 = vmul.f32 %v2310_v5, %v3998_v29 }
 0x498   : > { %v2317_v52 = vmul.f32 %v2310_v5, %v4018_v62  ;;  %v2319_v12 = vmul.f32 %v2310_v5, %v4036_v24  ;;  %v2313_v8 = vmul.f32 %v2310_v5, %v3992_v21  ;;  %v2316_v25 = vmul.f32 %v2310_v5, %v4011_v2 }
 0x499   : > { %v2392_v13 = vmul.f32 %v3982_v50, %v2312_v63  ;;  %v2394_v3 = vmul.f32 %v3980_v19, %v2314_v39  ;;  %v2391_v34 = vmul.f32 %v3976_v1, %v2311_v53  ;;  %v2318_v31 = vmul.f32 %v2310_v5, %v4026_v20  ;;  %v2449_v1 = vpop.permute.xlu2 %2448 }
 0x49a   : > { %v2393_v45 = vmul.f32 %v4033_v56, %v2313_v8  ;;  %v2395_v21 = vmul.f32 %v4002_v46, %v2315_v17  ;;  %v2320_v50 = vmul.f32 %v2310_v5, %v4042_v55  ;;  %v2397_v29 = vmul.f32 %v4031_v36, %v2317_v52  ;;  %v2457_v55 = vpop.permute.xlu1 %2456 }
 0x49b   : > { %v2472_v19 = vadd.f32 %v2413_v16, %v2392_v13  ;;  %v2396_v2 = vmul.f32 %v4000_v54, %v2316_v25  ;;  %v2323_v62 = vmul.f32 %v2310_v5, %v4062_v60  ;;  %v2321_v24 = vmul.f32 %v2310_v5, %v4048_v43  ;;  %v2453_v60 = vpop.permute.xlu0 %2452 }
 0x49c   : > { %v2398_v20 = vmul.f32 %v4069_v14, %v2318_v31  ;;  %v2473_v56 = vadd.f32 %v2417_v0, %v2393_v45  ;;  %v2474_v46 = vadd.f32 %v2421_v38, %v2394_v3  ;;  %v2471_v33 = vadd.f32 %v2409_v35, %v2391_v34 }
 0x49d   : > { %2488 = vst.msk [vmem:[%s4123_s27 + $0x8] sm:$0xff] %vm1592_vm4, %v2472_v19  ;;  %v2400_v36 = vmul.f32 %v4067_v30, %v2320_v50  ;;  %v2322_v54 = vmul.f32 %v2310_v5, %v4054_v7  ;;  %v2475_v16 = vadd.f32 %v2425_v37, %v2395_v21  ;;  %v2399_v43 = vmul.f32 %v4023_v15, %v2319_v12 }
 0x49e   : > { %v2324_v59 = vmul.f32 %v2310_v5, %v4072_v42  ;;  %2489 = vst.msk [vmem:[%s4123_s27 + $0x10] sm:$0xff] %vm1592_vm4, %v2473_v56  ;;  %v2477_v14 = vadd.f32 %v2433_v44, %v2397_v29  ;;  %v2401_v11 = vmul.f32 %v4099_v32, %v2321_v24  ;;  %v2326_v0 = vmul.f32 %v2310_v5, %v4084_v49 }
 0x49f   : > { %2490 = vst.msk [vmem:[%s4123_s27 + $0x18] sm:$0xff] %vm1592_vm4, %v2474_v46  ;;  %v2476_v7 = vadd.f32 %v2429_v9, %v2396_v2  ;;  %v2403_v30 = vmul.f32 %v4097_v23, %v2323_v62  ;;  %v2325_v15 = vmul.f32 %v2310_v5, %v4078_v27  ;;  %v2478_v42 = vadd.f32 %v2437_v28, %v2398_v20 }
 0x4a0   : > { %2487 = vst.msk [vmem:[%s4123_s27] sm:$0xff] %vm1592_vm4, %v2471_v33  ;;  %v2402_v26 = vmul.f32 %v4059_v4, %v2322_v54  ;;  %v2480_v32 = vadd.f32 %v2445_v18, %v2400_v36  ;;  %v2404_v49 = vmul.f32 %v4105_v57, %v2324_v59  ;;  %v2479_v38 = vadd.f32 %v2441_v58, %v2399_v43 }
 0x4a1   : > { %2491 = vst.msk [vmem:[%s4123_s27 + $0x20] sm:$0xff] %vm1592_vm4, %v2475_v16  ;;  %v2406_v23 = vmul.f32 %v4103_v47, %v2326_v0  ;;  %v2481_v27 = vadd.f32 %v2449_v1, %v2401_v11  ;;  %v2405_v35 = vmul.f32 %v4092_v41, %v2325_v15  ;;  %v2483_v4 = vadd.f32 %v2457_v55, %v2403_v30  ;;  %v2461_v61 = vpop.permute.xlu2 %2460 }
 0x4a2   : > { %2493 = vst.msk [vmem:[%s4123_s27 + $0x30] sm:$0xff] %vm1592_vm4, %v2477_v14  ;;  %v2482_v57 = vadd.f32 %v2453_v60, %v2402_v26  ;;  %v2484_v37 = vadd.f32 %v2461_v61, %v2404_v49  ;;  %v2469_v47 = vpop.permute.xlu1 %2468 }
 0x4a3   : > { %2492 = vst.msk [vmem:[%s4123_s27 + $0x28] sm:$0xff] %vm1592_vm4, %v2476_v7  ;;  %v2486_v48 = vadd.f32 %v2469_v47, %v2406_v23  ;;  %v2465_v44 = vpop.permute.xlu0 %2464 }
 0x4a4   : > { %2494 = vst.msk [vmem:[%s4123_s27 + $0x38] sm:$0xff] %vm1592_vm4, %v2478_v42  ;;  %v2485_v41 = vadd.f32 %v2465_v44, %v2405_v35 }
 0x4a5   : > { %2496 = vst.msk [vmem:[%s4123_s27 + $0x48] sm:$0xff] %vm1592_vm4, %v2480_v32 }
 0x4a6   : > { %2495 = vst.msk [vmem:[%s4123_s27 + $0x40] sm:$0xff] %vm1592_vm4, %v2479_v38 }
 0x4a7   : > { %2497 = vst.msk [vmem:[%s4123_s27 + $0x50] sm:$0xff] %vm1592_vm4, %v2481_v27 }
 0x4a8   : > { %2499 = vst.msk [vmem:[%s4123_s27 + $0x60] sm:$0xff] %vm1592_vm4, %v2483_v4 }
 0x4a9   : > { %2498 = vst.msk [vmem:[%s4123_s27 + $0x58] sm:$0xff] %vm1592_vm4, %v2482_v57 }
 0x4aa   : > { %2500 = vst.msk [vmem:[%s4123_s27 + $0x68] sm:$0xff] %vm1592_vm4, %v2484_v37 }
 0x4ab   : > { %2502 = vst.msk [vmem:[%s4123_s27 + $0x78] sm:$0xff] %vm1592_vm4, %v2486_v48 }
 0x4ac   : > { %2501 = vst.msk [vmem:[%s4123_s27 + $0x70] sm:$0xff] %vm1592_vm4, %v2485_v41 }
 0x4ad PF: > { %s15_s15 = sadd.s32 1, %s3061_s15  }
 0x4ae   : > { %p12_p7 = scmp.ge.s32.totalorder %s15_s15, 4  }
 0x4b0   :  { %14 = sbr.rel (!%p12_p7) target bundleno = 1 (0x1), region = 77 }
 0x4b5   :  { %2524 = vsyncpa [#allocation5], 1 }
 0x4b6   :  { %2526 = vsyncpa [#allocation5 + $0x1], 1 }

</bundles_post_ra>
